<compile_context>
chip_gen: v6e
topology: v6e:2x2x1
jax: 0.10.0
libtpu: 0.0.40
codegen_flags: <defaults>
</compile_context>

<pallas_src>
import jax
import jax.numpy as jnp
from jax.experimental import pallas as pl
from jax.experimental.pallas import tpu as pltpu

LABEL_NC = 8  # opt.label_nc


# ----------------------------------------------------------------------------
# Fused kernel: one-hot -> masked image -> 1x1 conv + tanh -> mask-mix
# ----------------------------------------------------------------------------
def _fused_kernel(label_ref, image_ref, mask_ref, w_ref, b_ref,
                  sem_ref, masked_ref, fake_ref):
    # label_ref : (1, HT, W) int32             VMEM
    # image_ref : (1, 3, HT, W) f32            VMEM
    # mask_ref  : (1, HT, W) f32               VMEM
    # w_ref     : (3 * (3+nc+1),) f32          SMEM (flat scalars, row-major)
    # b_ref     : (3,) f32                     SMEM (scalars)
    # sem_ref   : (1, nc+1, HT, W) f32         VMEM out
    # masked_ref: (1, 3, HT, W) f32            VMEM out
    # fake_ref  : (1, 3, HT, W) f32            VMEM out
    nc = sem_ref.shape[1] - 1
    cin = 3 + nc + 1
    ht, wd = label_ref.shape[1], label_ref.shape[2]

    lbl = label_ref[0]                       # (HT, W) int32
    m = mask_ref[0]                          # (HT, W) f32
    one_minus_m = 1.0 - m                    # == appended semantics channel

    # conv accumulators start at the bias (SMEM scalar splat, hoisted once).
    y = [jnp.full((ht, wd), b_ref[c], dtype=jnp.float32) for c in range(3)]

    # masked = image * mask  (store each plane as it is produced, feed conv)
    for k in range(3):
        mk = image_ref[0, k] * m
        masked_ref[0, k] = mk
        for c in range(3):
            y[c] = y[c] + w_ref[c * cin + k] * mk

    # get_semantics: scatter_(1, label, 1.0) == (channel_id == label)
    # NOTE: out-of-range labels yield an all-zero semantic vector here
    # (PyTorch scatter_ would raise); inputs are assumed in [0, nc).
    for k in range(nc):
        oh = (lbl == k).astype(jnp.float32)
        sem_ref[0, k] = oh
        for c in range(3):
            y[c] = y[c] + w_ref[c * cin + 3 + k] * oh

    # input_semantics last channel = 1 - mask
    sem_ref[0, nc] = one_minus_m
    for c in range(3):
        y[c] = y[c] + w_ref[c * cin + 3 + nc] * one_minus_m

    # netG substitute: tanh on the EUP, then
    # fake = (1-gm)*real + gm*fake with gm = 1 - mask.
    # TODO(synk): optionally emit bf16 outputs; kept f32 for exact parity.
    for c in range(3):
        fake_ref[0, c] = m * image_ref[0, c] + one_minus_m * jnp.tanh(y[c])


def _choose_h_tile(B, H, W, nc, vmem_budget_bytes=12 * 1024 * 1024):
    """Largest H tile (multiple of 8 dividing H) whose double-buffered block
    set fits a conservative VMEM budget (<= v5e's 16 MiB scoped default)."""
    rows = 1 + 1 + 3 + (nc + 1) + 3 + 3        # label, mask, image, sem, masked, fake
    bytes_per_h_row = rows * W * 4 * 2         # f32/int32, x2 double buffering
    cap = max(8, vmem_budget_bytes // max(1, bytes_per_h_row))
    if H % 8 != 0:
        return H                               # tiny/odd extent: full block (allowed)
    tile = 8
    for cand in range(8, H + 1, 8):
        if H % cand == 0 and cand <= cap:
            tile = cand
    # keep >= 2 grid points so both v7x TensorCores get work
    while (B * (H // tile) < 2 and tile % 16 == 0 and H % (tile // 2) == 0):
        tile //= 2
    return tile


def pix2pix_inference(label, image, mask, w, bias, nc=LABEL_NC):
    """Returns (fake_image, masked_image, input_semantics) -- inference mode."""
    B, _, H, W = image.shape
    HW = H * W
    cin = 3 + nc + 1

    label3 = label.reshape(B, H, W).astype(jnp.int32)
    mask3 = mask.reshape(B, H, W).astype(jnp.float32)
    image = image.astype(jnp.float32)
    w_flat = w.reshape(-1).astype(jnp.float32)          # (3*cin,) flat SMEM (no 2-D pad)
    bias = bias.reshape(-1).astype(jnp.float32)

    ht = _choose_h_tile(B, H, W, nc)
    grid = (B, H // ht)

    P = B * HW
    cost = pl.CostEstimate(
        flops=P * (3 + 2 * 3 * cin + nc + 9 + 1),        # mask-mul + conv FMAs + onehot cmp + mix
        transcendentals=3 * P,                            # tanh per output channel
        bytes_accessed=4 * P * (1 + 3 + 1 + (nc + 1) + 3 + 3),
    )

    sem, masked, fake = pl.pallas_call(
        _fused_kernel,
        grid=grid,
        in_specs=[
            pl.BlockSpec((1, ht, W), lambda bi, hi: (bi, hi, 0)),        # label
            pl.BlockSpec((1, 3, ht, W), lambda bi, hi: (bi, 0, hi, 0)),  # image
            pl.BlockSpec((1, ht, W), lambda bi, hi: (bi, hi, 0)),        # mask
            pl.BlockSpec(memory_space=pltpu.MemorySpace.SMEM),           # w  (3*cin,)
            pl.BlockSpec(memory_space=pltpu.MemorySpace.SMEM),           # bias (3,)
        ],
        out_specs=[
            pl.BlockSpec((1, nc + 1, ht, W), lambda bi, hi: (bi, 0, hi, 0)),
            pl.BlockSpec((1, 3, ht, W), lambda bi, hi: (bi, 0, hi, 0)),
            pl.BlockSpec((1, 3, ht, W), lambda bi, hi: (bi, 0, hi, 0)),
        ],
        out_shape=[
            jax.ShapeDtypeStruct((B, nc + 1, H, W), jnp.float32),
            jax.ShapeDtypeStruct((B, 3, H, W), jnp.float32),
            jax.ShapeDtypeStruct((B, 3, H, W), jnp.float32),
        ],
        compiler_params=pltpu.CompilerParams(
            dimension_semantics=("parallel", "parallel")),
        cost_estimate=cost,
    )(label3, image, mask3, w_flat, bias)

    return fake, masked, sem


# ----------------------------------------------------------------------------
# Pure-JAX reference for correctness checking
# ----------------------------------------------------------------------------
def reference(label, image, mask, w, bias, nc):
    onehot = (label[:, 0][:, None] ==
              jnp.arange(nc, dtype=jnp.int32)[None, :, None, None]).astype(jnp.float32)
    sem = jnp.concatenate([onehot, 1.0 - mask], axis=1)
    masked = image * mask
    x = jnp.concatenate([masked, sem], axis=1)
    y = jnp.einsum('oc,bchw->bohw', w, x) + bias.reshape(1, 3, 1, 1)
    fake = jnp.tanh(y)
    gm = sem[:, -1:]
    fake = (1.0 - gm) * image + gm * fake
    return fake, masked, sem


if __name__ == "__main__":
    key = jax.random.PRNGKey(0)
    k1, k2, k3, k4 = jax.random.split(key, 4)

    B, H, W = 2, 16, 16
    nc = LABEL_NC
    Cin = 3 + nc + 1          # masked image channels + semantics (incl. 1-mask)
    Cout = 3

    label = jax.random.randint(k1, (B, 1, H, W), 0, nc, dtype=jnp.int32)
    image = jax.random.normal(k2, (B, 3, H, W), dtype=jnp.float32)
    mask = (jax.random.uniform(k3, (B, 1, H, W)) > 0.5).astype(jnp.float32)

    # deterministic synthetic netG parameters (1x1 conv)
    w = jax.random.normal(k4, (Cout, Cin), dtype=jnp.float32) * 0.1
    bias = jnp.zeros((Cout,), dtype=jnp.float32)

    fake, masked, sem = pix2pix_inference(label, image, mask, w, bias, nc)
    jax.block_until_ready(fake)

    # the module's asserts: input_semantics.sum(1).max()==1 and .min()==1
    s = sem[:, :nc].sum(axis=1)
    assert float(s.max()) == 1.0 and float(s.min()) == 1.0

    rf, rm, rs = reference(label, image, mask, w, bias, nc)
    assert jnp.allclose(sem, rs, atol=1e-5)
    assert jnp.allclose(masked, rm, atol=1e-5)
    assert jnp.allclose(fake, rf, atol=1e-5)

    print("KERNEL_OK")
</pallas_src>

<mosaic_0001>
module attributes {stable_mosaic.version = 11 : i64} {
  func.func @_fused_kernel(%arg0: i32, %arg1: i32, %arg2: memref<1x16x16xi32, #tpu.memory_space<vmem>>, %arg3: memref<1x3x16x16xf32, #tpu.memory_space<vmem>>, %arg4: memref<1x16x16xf32, #tpu.memory_space<vmem>>, %arg5: memref<36xf32, #tpu.memory_space<smem>>, %arg6: memref<3xf32, #tpu.memory_space<smem>>, %arg7: memref<1x9x16x16xf32, #tpu.memory_space<vmem>>, %arg8: memref<1x3x16x16xf32, #tpu.memory_space<vmem>>, %arg9: memref<1x3x16x16xf32, #tpu.memory_space<vmem>>) attributes {dimension_semantics = [#tpu.dimension_semantics<parallel>, #tpu.dimension_semantics<parallel>], iteration_bounds = array<i64: 2, 1>, scalar_prefetch = 0 : i64, scratch_operands = 0 : i64, tpu.core_type = #tpu.core_type<tc>, window_params = [{transform_indices = @transform_0, window_bounds = array<i64: 1, 16, 16>}, {transform_indices = @transform_1, window_bounds = array<i64: 1, 3, 16, 16>}, {transform_indices = @transform_2, window_bounds = array<i64: 1, 16, 16>}, {transform_indices = @transform_3, window_bounds = array<i64: 36>}, {transform_indices = @transform_4, window_bounds = array<i64: 3>}, {transform_indices = @transform_5, window_bounds = array<i64: 1, 9, 16, 16>}, {transform_indices = @transform_6, window_bounds = array<i64: 1, 3, 16, 16>}, {transform_indices = @transform_7, window_bounds = array<i64: 1, 3, 16, 16>}]} {
    %c0 = arith.constant 0 : index
    %c0_0 = arith.constant 0 : index
    %c0_1 = arith.constant 0 : index
    %0 = vector.load %arg2[%c0, %c0_0, %c0_1] : memref<1x16x16xi32, #tpu.memory_space<vmem>>, vector<1x16x16xi32>
    %1 = vector.shape_cast %0 : vector<1x16x16xi32> to vector<16x16xi32>
    %c0_2 = arith.constant 0 : index
    %c0_3 = arith.constant 0 : index
    %c0_4 = arith.constant 0 : index
    %2 = vector.load %arg4[%c0_2, %c0_3, %c0_4] : memref<1x16x16xf32, #tpu.memory_space<vmem>>, vector<1x16x16xf32>
    %3 = vector.shape_cast %2 : vector<1x16x16xf32> to vector<16x16xf32>
    %cst = arith.constant 1.000000e+00 : f32
    %4 = vector.broadcast %cst : f32 to vector<16x16xf32>
    %5 = arith.subf %4, %3 : vector<16x16xf32>
    %c0_5 = arith.constant 0 : index
    %6 = memref.load %arg6[%c0_5] : memref<3xf32, #tpu.memory_space<smem>>
    %7 = vector.broadcast %6 : f32 to vector<16x16xf32>
    %c1 = arith.constant 1 : index
    %8 = memref.load %arg6[%c1] : memref<3xf32, #tpu.memory_space<smem>>
    %9 = vector.broadcast %8 : f32 to vector<16x16xf32>
    %c2 = arith.constant 2 : index
    %10 = memref.load %arg6[%c2] : memref<3xf32, #tpu.memory_space<smem>>
    %11 = vector.broadcast %10 : f32 to vector<16x16xf32>
    %c0_6 = arith.constant 0 : index
    %c0_7 = arith.constant 0 : index
    %c0_8 = arith.constant 0 : index
    %c0_9 = arith.constant 0 : index
    %12 = vector.load %arg3[%c0_6, %c0_7, %c0_8, %c0_9] : memref<1x3x16x16xf32, #tpu.memory_space<vmem>>, vector<1x1x16x16xf32>
    %13 = vector.shape_cast %12 : vector<1x1x16x16xf32> to vector<16x16xf32>
    %14 = arith.mulf %13, %3 : vector<16x16xf32>
    %c0_10 = arith.constant 0 : index
    %c0_11 = arith.constant 0 : index
    %c0_12 = arith.constant 0 : index
    %c0_13 = arith.constant 0 : index
    %15 = vector.load %arg8[%c0_10, %c0_11, %c0_12, %c0_13] : memref<1x3x16x16xf32, #tpu.memory_space<vmem>>, vector<1x1x16x16xf32>
    %16 = vector.shape_cast %15 : vector<1x1x16x16xf32> to vector<16x16xf32>
    %17 = vector.shape_cast %14 : vector<16x16xf32> to vector<1x1x16x16xf32>
    tpu.vector_store %arg8[%c0_10, %c0_11, %c0_12, %c0_13], %17 {strides = array<i32>} : memref<1x3x16x16xf32, #tpu.memory_space<vmem>>, vector<1x1x16x16xf32>,
    %c0_14 = arith.constant 0 : index
    %18 = memref.load %arg5[%c0_14] : memref<36xf32, #tpu.memory_space<smem>>
    %19 = vector.broadcast %18 : f32 to vector<16x16xf32>
    %20 = arith.mulf %19, %14 : vector<16x16xf32>
    %21 = arith.addf %7, %20 : vector<16x16xf32>
    %c12 = arith.constant 12 : index
    %22 = memref.load %arg5[%c12] : memref<36xf32, #tpu.memory_space<smem>>
    %23 = vector.broadcast %22 : f32 to vector<16x16xf32>
    %24 = arith.mulf %23, %14 : vector<16x16xf32>
    %25 = arith.addf %9, %24 : vector<16x16xf32>
    %c24 = arith.constant 24 : index
    %26 = memref.load %arg5[%c24] : memref<36xf32, #tpu.memory_space<smem>>
    %27 = vector.broadcast %26 : f32 to vector<16x16xf32>
    %28 = arith.mulf %27, %14 : vector<16x16xf32>
    %29 = arith.addf %11, %28 : vector<16x16xf32>
    %c0_15 = arith.constant 0 : index
    %c1_16 = arith.constant 1 : index
    %c0_17 = arith.constant 0 : index
    %c0_18 = arith.constant 0 : index
    %30 = vector.load %arg3[%c0_15, %c1_16, %c0_17, %c0_18] : memref<1x3x16x16xf32, #tpu.memory_space<vmem>>, vector<1x1x16x16xf32>
    %31 = vector.shape_cast %30 : vector<1x1x16x16xf32> to vector<16x16xf32>
    %32 = arith.mulf %31, %3 : vector<16x16xf32>
    %c0_19 = arith.constant 0 : index
    %c1_20 = arith.constant 1 : index
    %c0_21 = arith.constant 0 : index
    %c0_22 = arith.constant 0 : index
    %33 = vector.load %arg8[%c0_19, %c1_20, %c0_21, %c0_22] : memref<1x3x16x16xf32, #tpu.memory_space<vmem>>, vector<1x1x16x16xf32>
    %34 = vector.shape_cast %33 : vector<1x1x16x16xf32> to vector<16x16xf32>
    %35 = vector.shape_cast %32 : vector<16x16xf32> to vector<1x1x16x16xf32>
    tpu.vector_store %arg8[%c0_19, %c1_20, %c0_21, %c0_22], %35 {strides = array<i32>} : memref<1x3x16x16xf32, #tpu.memory_space<vmem>>, vector<1x1x16x16xf32>,
    %c1_23 = arith.constant 1 : index
    %36 = memref.load %arg5[%c1_23] : memref<36xf32, #tpu.memory_space<smem>>
    %37 = vector.broadcast %36 : f32 to vector<16x16xf32>
    %38 = arith.mulf %37, %32 : vector<16x16xf32>
    %39 = arith.addf %21, %38 : vector<16x16xf32>
    %c13 = arith.constant 13 : index
    %40 = memref.load %arg5[%c13] : memref<36xf32, #tpu.memory_space<smem>>
    %41 = vector.broadcast %40 : f32 to vector<16x16xf32>
    %42 = arith.mulf %41, %32 : vector<16x16xf32>
    %43 = arith.addf %25, %42 : vector<16x16xf32>
    %c25 = arith.constant 25 : index
    %44 = memref.load %arg5[%c25] : memref<36xf32, #tpu.memory_space<smem>>
    %45 = vector.broadcast %44 : f32 to vector<16x16xf32>
    %46 = arith.mulf %45, %32 : vector<16x16xf32>
    %47 = arith.addf %29, %46 : vector<16x16xf32>
    %c0_24 = arith.constant 0 : index
    %c2_25 = arith.constant 2 : index
    %c0_26 = arith.constant 0 : index
    %c0_27 = arith.constant 0 : index
    %48 = vector.load %arg3[%c0_24, %c2_25, %c0_26, %c0_27] : memref<1x3x16x16xf32, #tpu.memory_space<vmem>>, vector<1x1x16x16xf32>
    %49 = vector.shape_cast %48 : vector<1x1x16x16xf32> to vector<16x16xf32>
    %50 = arith.mulf %49, %3 : vector<16x16xf32>
    %c0_28 = arith.constant 0 : index
    %c2_29 = arith.constant 2 : index
    %c0_30 = arith.constant 0 : index
    %c0_31 = arith.constant 0 : index
    %51 = vector.load %arg8[%c0_28, %c2_29, %c0_30, %c0_31] : memref<1x3x16x16xf32, #tpu.memory_space<vmem>>, vector<1x1x16x16xf32>
    %52 = vector.shape_cast %51 : vector<1x1x16x16xf32> to vector<16x16xf32>
    %53 = vector.shape_cast %50 : vector<16x16xf32> to vector<1x1x16x16xf32>
    tpu.vector_store %arg8[%c0_28, %c2_29, %c0_30, %c0_31], %53 {strides = array<i32>} : memref<1x3x16x16xf32, #tpu.memory_space<vmem>>, vector<1x1x16x16xf32>,
    %c2_32 = arith.constant 2 : index
    %54 = memref.load %arg5[%c2_32] : memref<36xf32, #tpu.memory_space<smem>>
    %55 = vector.broadcast %54 : f32 to vector<16x16xf32>
    %56 = arith.mulf %55, %50 : vector<16x16xf32>
    %57 = arith.addf %39, %56 : vector<16x16xf32>
    %c14 = arith.constant 14 : index
    %58 = memref.load %arg5[%c14] : memref<36xf32, #tpu.memory_space<smem>>
    %59 = vector.broadcast %58 : f32 to vector<16x16xf32>
    %60 = arith.mulf %59, %50 : vector<16x16xf32>
    %61 = arith.addf %43, %60 : vector<16x16xf32>
    %c26 = arith.constant 26 : index
    %62 = memref.load %arg5[%c26] : memref<36xf32, #tpu.memory_space<smem>>
    %63 = vector.broadcast %62 : f32 to vector<16x16xf32>
    %64 = arith.mulf %63, %50 : vector<16x16xf32>
    %65 = arith.addf %47, %64 : vector<16x16xf32>
    %c0_i32 = arith.constant 0 : i32
    %66 = vector.broadcast %c0_i32 : i32 to vector<16x16xi32>
    %67 = arith.cmpi eq, %1, %66 : vector<16x16xi32>
    %68 = arith.extui %67 : vector<16x16xi1> to vector<16x16xi32>
    %69 = arith.sitofp %68 : vector<16x16xi32> to vector<16x16xf32>
    %c0_33 = arith.constant 0 : index
    %c0_34 = arith.constant 0 : index
    %c0_35 = arith.constant 0 : index
    %c0_36 = arith.constant 0 : index
    %70 = vector.load %arg7[%c0_33, %c0_34, %c0_35, %c0_36] : memref<1x9x16x16xf32, #tpu.memory_space<vmem>>, vector<1x1x16x16xf32>
    %71 = vector.shape_cast %70 : vector<1x1x16x16xf32> to vector<16x16xf32>
    %72 = vector.shape_cast %69 : vector<16x16xf32> to vector<1x1x16x16xf32>
    tpu.vector_store %arg7[%c0_33, %c0_34, %c0_35, %c0_36], %72 {strides = array<i32>} : memref<1x9x16x16xf32, #tpu.memory_space<vmem>>, vector<1x1x16x16xf32>,
    %c3 = arith.constant 3 : index
    %73 = memref.load %arg5[%c3] : memref<36xf32, #tpu.memory_space<smem>>
    %74 = vector.broadcast %73 : f32 to vector<16x16xf32>
    %75 = arith.mulf %74, %69 : vector<16x16xf32>
    %76 = arith.addf %57, %75 : vector<16x16xf32>
    %c15 = arith.constant 15 : index
    %77 = memref.load %arg5[%c15] : memref<36xf32, #tpu.memory_space<smem>>
    %78 = vector.broadcast %77 : f32 to vector<16x16xf32>
    %79 = arith.mulf %78, %69 : vector<16x16xf32>
    %80 = arith.addf %61, %79 : vector<16x16xf32>
    %c27 = arith.constant 27 : index
    %81 = memref.load %arg5[%c27] : memref<36xf32, #tpu.memory_space<smem>>
    %82 = vector.broadcast %81 : f32 to vector<16x16xf32>
    %83 = arith.mulf %82, %69 : vector<16x16xf32>
    %84 = arith.addf %65, %83 : vector<16x16xf32>
    %c1_i32 = arith.constant 1 : i32
    %85 = vector.broadcast %c1_i32 : i32 to vector<16x16xi32>
    %86 = arith.cmpi eq, %1, %85 : vector<16x16xi32>
    %87 = arith.extui %86 : vector<16x16xi1> to vector<16x16xi32>
    %88 = arith.sitofp %87 : vector<16x16xi32> to vector<16x16xf32>
    %c0_37 = arith.constant 0 : index
    %c1_38 = arith.constant 1 : index
    %c0_39 = arith.constant 0 : index
    %c0_40 = arith.constant 0 : index
    %89 = vector.load %arg7[%c0_37, %c1_38, %c0_39, %c0_40] : memref<1x9x16x16xf32, #tpu.memory_space<vmem>>, vector<1x1x16x16xf32>
    %90 = vector.shape_cast %89 : vector<1x1x16x16xf32> to vector<16x16xf32>
    %91 = vector.shape_cast %88 : vector<16x16xf32> to vector<1x1x16x16xf32>
    tpu.vector_store %arg7[%c0_37, %c1_38, %c0_39, %c0_40], %91 {strides = array<i32>} : memref<1x9x16x16xf32, #tpu.memory_space<vmem>>, vector<1x1x16x16xf32>,
    %c4 = arith.constant 4 : index
    %92 = memref.load %arg5[%c4] : memref<36xf32, #tpu.memory_space<smem>>
    %93 = vector.broadcast %92 : f32 to vector<16x16xf32>
    %94 = arith.mulf %93, %88 : vector<16x16xf32>
    %95 = arith.addf %76, %94 : vector<16x16xf32>
    %c16 = arith.constant 16 : index
    %96 = memref.load %arg5[%c16] : memref<36xf32, #tpu.memory_space<smem>>
    %97 = vector.broadcast %96 : f32 to vector<16x16xf32>
    %98 = arith.mulf %97, %88 : vector<16x16xf32>
    %99 = arith.addf %80, %98 : vector<16x16xf32>
    %c28 = arith.constant 28 : index
    %100 = memref.load %arg5[%c28] : memref<36xf32, #tpu.memory_space<smem>>
    %101 = vector.broadcast %100 : f32 to vector<16x16xf32>
    %102 = arith.mulf %101, %88 : vector<16x16xf32>
    %103 = arith.addf %84, %102 : vector<16x16xf32>
    %c2_i32 = arith.constant 2 : i32
    %104 = vector.broadcast %c2_i32 : i32 to vector<16x16xi32>
    %105 = arith.cmpi eq, %1, %104 : vector<16x16xi32>
    %106 = arith.extui %105 : vector<16x16xi1> to vector<16x16xi32>
    %107 = arith.sitofp %106 : vector<16x16xi32> to vector<16x16xf32>
    %c0_41 = arith.constant 0 : index
    %c2_42 = arith.constant 2 : index
    %c0_43 = arith.constant 0 : index
    %c0_44 = arith.constant 0 : index
    %108 = vector.load %arg7[%c0_41, %c2_42, %c0_43, %c0_44] : memref<1x9x16x16xf32, #tpu.memory_space<vmem>>, vector<1x1x16x16xf32>
    %109 = vector.shape_cast %108 : vector<1x1x16x16xf32> to vector<16x16xf32>
    %110 = vector.shape_cast %107 : vector<16x16xf32> to vector<1x1x16x16xf32>
    tpu.vector_store %arg7[%c0_41, %c2_42, %c0_43, %c0_44], %110 {strides = array<i32>} : memref<1x9x16x16xf32, #tpu.memory_space<vmem>>, vector<1x1x16x16xf32>,
    %c5 = arith.constant 5 : index
    %111 = memref.load %arg5[%c5] : memref<36xf32, #tpu.memory_space<smem>>
    %112 = vector.broadcast %111 : f32 to vector<16x16xf32>
    %113 = arith.mulf %112, %107 : vector<16x16xf32>
    %114 = arith.addf %95, %113 : vector<16x16xf32>
    %c17 = arith.constant 17 : index
    %115 = memref.load %arg5[%c17] : memref<36xf32, #tpu.memory_space<smem>>
    %116 = vector.broadcast %115 : f32 to vector<16x16xf32>
    %117 = arith.mulf %116, %107 : vector<16x16xf32>
    %118 = arith.addf %99, %117 : vector<16x16xf32>
    %c29 = arith.constant 29 : index
    %119 = memref.load %arg5[%c29] : memref<36xf32, #tpu.memory_space<smem>>
    %120 = vector.broadcast %119 : f32 to vector<16x16xf32>
    %121 = arith.mulf %120, %107 : vector<16x16xf32>
    %122 = arith.addf %103, %121 : vector<16x16xf32>
    %c3_i32 = arith.constant 3 : i32
    %123 = vector.broadcast %c3_i32 : i32 to vector<16x16xi32>
    %124 = arith.cmpi eq, %1, %123 : vector<16x16xi32>
    %125 = arith.extui %124 : vector<16x16xi1> to vector<16x16xi32>
    %126 = arith.sitofp %125 : vector<16x16xi32> to vector<16x16xf32>
    %c0_45 = arith.constant 0 : index
    %c3_46 = arith.constant 3 : index
    %c0_47 = arith.constant 0 : index
    %c0_48 = arith.constant 0 : index
    %127 = vector.load %arg7[%c0_45, %c3_46, %c0_47, %c0_48] : memref<1x9x16x16xf32, #tpu.memory_space<vmem>>, vector<1x1x16x16xf32>
    %128 = vector.shape_cast %127 : vector<1x1x16x16xf32> to vector<16x16xf32>
    %129 = vector.shape_cast %126 : vector<16x16xf32> to vector<1x1x16x16xf32>
    tpu.vector_store %arg7[%c0_45, %c3_46, %c0_47, %c0_48], %129 {strides = array<i32>} : memref<1x9x16x16xf32, #tpu.memory_space<vmem>>, vector<1x1x16x16xf32>,
    %c6 = arith.constant 6 : index
    %130 = memref.load %arg5[%c6] : memref<36xf32, #tpu.memory_space<smem>>
    %131 = vector.broadcast %130 : f32 to vector<16x16xf32>
    %132 = arith.mulf %131, %126 : vector<16x16xf32>
    %133 = arith.addf %114, %132 : vector<16x16xf32>
    %c18 = arith.constant 18 : index
    %134 = memref.load %arg5[%c18] : memref<36xf32, #tpu.memory_space<smem>>
    %135 = vector.broadcast %134 : f32 to vector<16x16xf32>
    %136 = arith.mulf %135, %126 : vector<16x16xf32>
    %137 = arith.addf %118, %136 : vector<16x16xf32>
    %c30 = arith.constant 30 : index
    %138 = memref.load %arg5[%c30] : memref<36xf32, #tpu.memory_space<smem>>
    %139 = vector.broadcast %138 : f32 to vector<16x16xf32>
    %140 = arith.mulf %139, %126 : vector<16x16xf32>
    %141 = arith.addf %122, %140 : vector<16x16xf32>
    %c4_i32 = arith.constant 4 : i32
    %142 = vector.broadcast %c4_i32 : i32 to vector<16x16xi32>
    %143 = arith.cmpi eq, %1, %142 : vector<16x16xi32>
    %144 = arith.extui %143 : vector<16x16xi1> to vector<16x16xi32>
    %145 = arith.sitofp %144 : vector<16x16xi32> to vector<16x16xf32>
    %c0_49 = arith.constant 0 : index
    %c4_50 = arith.constant 4 : index
    %c0_51 = arith.constant 0 : index
    %c0_52 = arith.constant 0 : index
    %146 = vector.load %arg7[%c0_49, %c4_50, %c0_51, %c0_52] : memref<1x9x16x16xf32, #tpu.memory_space<vmem>>, vector<1x1x16x16xf32>
    %147 = vector.shape_cast %146 : vector<1x1x16x16xf32> to vector<16x16xf32>
    %148 = vector.shape_cast %145 : vector<16x16xf32> to vector<1x1x16x16xf32>
    tpu.vector_store %arg7[%c0_49, %c4_50, %c0_51, %c0_52], %148 {strides = array<i32>} : memref<1x9x16x16xf32, #tpu.memory_space<vmem>>, vector<1x1x16x16xf32>,
    %c7 = arith.constant 7 : index
    %149 = memref.load %arg5[%c7] : memref<36xf32, #tpu.memory_space<smem>>
    %150 = vector.broadcast %149 : f32 to vector<16x16xf32>
    %151 = arith.mulf %150, %145 : vector<16x16xf32>
    %152 = arith.addf %133, %151 : vector<16x16xf32>
    %c19 = arith.constant 19 : index
    %153 = memref.load %arg5[%c19] : memref<36xf32, #tpu.memory_space<smem>>
    %154 = vector.broadcast %153 : f32 to vector<16x16xf32>
    %155 = arith.mulf %154, %145 : vector<16x16xf32>
    %156 = arith.addf %137, %155 : vector<16x16xf32>
    %c31 = arith.constant 31 : index
    %157 = memref.load %arg5[%c31] : memref<36xf32, #tpu.memory_space<smem>>
    %158 = vector.broadcast %157 : f32 to vector<16x16xf32>
    %159 = arith.mulf %158, %145 : vector<16x16xf32>
    %160 = arith.addf %141, %159 : vector<16x16xf32>
    %c5_i32 = arith.constant 5 : i32
    %161 = vector.broadcast %c5_i32 : i32 to vector<16x16xi32>
    %162 = arith.cmpi eq, %1, %161 : vector<16x16xi32>
    %163 = arith.extui %162 : vector<16x16xi1> to vector<16x16xi32>
    %164 = arith.sitofp %163 : vector<16x16xi32> to vector<16x16xf32>
    %c0_53 = arith.constant 0 : index
    %c5_54 = arith.constant 5 : index
    %c0_55 = arith.constant 0 : index
    %c0_56 = arith.constant 0 : index
    %165 = vector.load %arg7[%c0_53, %c5_54, %c0_55, %c0_56] : memref<1x9x16x16xf32, #tpu.memory_space<vmem>>, vector<1x1x16x16xf32>
    %166 = vector.shape_cast %165 : vector<1x1x16x16xf32> to vector<16x16xf32>
    %167 = vector.shape_cast %164 : vector<16x16xf32> to vector<1x1x16x16xf32>
    tpu.vector_store %arg7[%c0_53, %c5_54, %c0_55, %c0_56], %167 {strides = array<i32>} : memref<1x9x16x16xf32, #tpu.memory_space<vmem>>, vector<1x1x16x16xf32>,
    %c8 = arith.constant 8 : index
    %168 = memref.load %arg5[%c8] : memref<36xf32, #tpu.memory_space<smem>>
    %169 = vector.broadcast %168 : f32 to vector<16x16xf32>
    %170 = arith.mulf %169, %164 : vector<16x16xf32>
    %171 = arith.addf %152, %170 : vector<16x16xf32>
    %c20 = arith.constant 20 : index
    %172 = memref.load %arg5[%c20] : memref<36xf32, #tpu.memory_space<smem>>
    %173 = vector.broadcast %172 : f32 to vector<16x16xf32>
    %174 = arith.mulf %173, %164 : vector<16x16xf32>
    %175 = arith.addf %156, %174 : vector<16x16xf32>
    %c32 = arith.constant 32 : index
    %176 = memref.load %arg5[%c32] : memref<36xf32, #tpu.memory_space<smem>>
    %177 = vector.broadcast %176 : f32 to vector<16x16xf32>
    %178 = arith.mulf %177, %164 : vector<16x16xf32>
    %179 = arith.addf %160, %178 : vector<16x16xf32>
    %c6_i32 = arith.constant 6 : i32
    %180 = vector.broadcast %c6_i32 : i32 to vector<16x16xi32>
    %181 = arith.cmpi eq, %1, %180 : vector<16x16xi32>
    %182 = arith.extui %181 : vector<16x16xi1> to vector<16x16xi32>
    %183 = arith.sitofp %182 : vector<16x16xi32> to vector<16x16xf32>
    %c0_57 = arith.constant 0 : index
    %c6_58 = arith.constant 6 : index
    %c0_59 = arith.constant 0 : index
    %c0_60 = arith.constant 0 : index
    %184 = vector.load %arg7[%c0_57, %c6_58, %c0_59, %c0_60] : memref<1x9x16x16xf32, #tpu.memory_space<vmem>>, vector<1x1x16x16xf32>
    %185 = vector.shape_cast %184 : vector<1x1x16x16xf32> to vector<16x16xf32>
    %186 = vector.shape_cast %183 : vector<16x16xf32> to vector<1x1x16x16xf32>
    tpu.vector_store %arg7[%c0_57, %c6_58, %c0_59, %c0_60], %186 {strides = array<i32>} : memref<1x9x16x16xf32, #tpu.memory_space<vmem>>, vector<1x1x16x16xf32>,
    %c9 = arith.constant 9 : index
    %187 = memref.load %arg5[%c9] : memref<36xf32, #tpu.memory_space<smem>>
    %188 = vector.broadcast %187 : f32 to vector<16x16xf32>
    %189 = arith.mulf %188, %183 : vector<16x16xf32>
    %190 = arith.addf %171, %189 : vector<16x16xf32>
    %c21 = arith.constant 21 : index
    %191 = memref.load %arg5[%c21] : memref<36xf32, #tpu.memory_space<smem>>
    %192 = vector.broadcast %191 : f32 to vector<16x16xf32>
    %193 = arith.mulf %192, %183 : vector<16x16xf32>
    %194 = arith.addf %175, %193 : vector<16x16xf32>
    %c33 = arith.constant 33 : index
    %195 = memref.load %arg5[%c33] : memref<36xf32, #tpu.memory_space<smem>>
    %196 = vector.broadcast %195 : f32 to vector<16x16xf32>
    %197 = arith.mulf %196, %183 : vector<16x16xf32>
    %198 = arith.addf %179, %197 : vector<16x16xf32>
    %c7_i32 = arith.constant 7 : i32
    %199 = vector.broadcast %c7_i32 : i32 to vector<16x16xi32>
    %200 = arith.cmpi eq, %1, %199 : vector<16x16xi32>
    %201 = arith.extui %200 : vector<16x16xi1> to vector<16x16xi32>
    %202 = arith.sitofp %201 : vector<16x16xi32> to vector<16x16xf32>
    %c0_61 = arith.constant 0 : index
    %c7_62 = arith.constant 7 : index
    %c0_63 = arith.constant 0 : index
    %c0_64 = arith.constant 0 : index
    %203 = vector.load %arg7[%c0_61, %c7_62, %c0_63, %c0_64] : memref<1x9x16x16xf32, #tpu.memory_space<vmem>>, vector<1x1x16x16xf32>
    %204 = vector.shape_cast %203 : vector<1x1x16x16xf32> to vector<16x16xf32>
    %205 = vector.shape_cast %202 : vector<16x16xf32> to vector<1x1x16x16xf32>
    tpu.vector_store %arg7[%c0_61, %c7_62, %c0_63, %c0_64], %205 {strides = array<i32>} : memref<1x9x16x16xf32, #tpu.memory_space<vmem>>, vector<1x1x16x16xf32>,
    %c10 = arith.constant 10 : index
    %206 = memref.load %arg5[%c10] : memref<36xf32, #tpu.memory_space<smem>>
    %207 = vector.broadcast %206 : f32 to vector<16x16xf32>
    %208 = arith.mulf %207, %202 : vector<16x16xf32>
    %209 = arith.addf %190, %208 : vector<16x16xf32>
    %c22 = arith.constant 22 : index
    %210 = memref.load %arg5[%c22] : memref<36xf32, #tpu.memory_space<smem>>
    %211 = vector.broadcast %210 : f32 to vector<16x16xf32>
    %212 = arith.mulf %211, %202 : vector<16x16xf32>
    %213 = arith.addf %194, %212 : vector<16x16xf32>
    %c34 = arith.constant 34 : index
    %214 = memref.load %arg5[%c34] : memref<36xf32, #tpu.memory_space<smem>>
    %215 = vector.broadcast %214 : f32 to vector<16x16xf32>
    %216 = arith.mulf %215, %202 : vector<16x16xf32>
    %217 = arith.addf %198, %216 : vector<16x16xf32>
    %c0_65 = arith.constant 0 : index
    %c8_66 = arith.constant 8 : index
    %c0_67 = arith.constant 0 : index
    %c0_68 = arith.constant 0 : index
    %218 = vector.load %arg7[%c0_65, %c8_66, %c0_67, %c0_68] : memref<1x9x16x16xf32, #tpu.memory_space<vmem>>, vector<1x1x16x16xf32>
    %219 = vector.shape_cast %218 : vector<1x1x16x16xf32> to vector<16x16xf32>
    %220 = vector.shape_cast %5 : vector<16x16xf32> to vector<1x1x16x16xf32>
    tpu.vector_store %arg7[%c0_65, %c8_66, %c0_67, %c0_68], %220 {strides = array<i32>} : memref<1x9x16x16xf32, #tpu.memory_space<vmem>>, vector<1x1x16x16xf32>,
    %c11 = arith.constant 11 : index
    %221 = memref.load %arg5[%c11] : memref<36xf32, #tpu.memory_space<smem>>
    %222 = vector.broadcast %221 : f32 to vector<16x16xf32>
    %223 = arith.mulf %222, %5 : vector<16x16xf32>
    %224 = arith.addf %209, %223 : vector<16x16xf32>
    %c23 = arith.constant 23 : index
    %225 = memref.load %arg5[%c23] : memref<36xf32, #tpu.memory_space<smem>>
    %226 = vector.broadcast %225 : f32 to vector<16x16xf32>
    %227 = arith.mulf %226, %5 : vector<16x16xf32>
    %228 = arith.addf %213, %227 : vector<16x16xf32>
    %c35 = arith.constant 35 : index
    %229 = memref.load %arg5[%c35] : memref<36xf32, #tpu.memory_space<smem>>
    %230 = vector.broadcast %229 : f32 to vector<16x16xf32>
    %231 = arith.mulf %230, %5 : vector<16x16xf32>
    %232 = arith.addf %217, %231 : vector<16x16xf32>
    %c0_69 = arith.constant 0 : index
    %c0_70 = arith.constant 0 : index
    %c0_71 = arith.constant 0 : index
    %c0_72 = arith.constant 0 : index
    %233 = vector.load %arg3[%c0_69, %c0_70, %c0_71, %c0_72] : memref<1x3x16x16xf32, #tpu.memory_space<vmem>>, vector<1x1x16x16xf32>
    %234 = vector.shape_cast %233 : vector<1x1x16x16xf32> to vector<16x16xf32>
    %235 = arith.mulf %3, %234 : vector<16x16xf32>
    %236 = math.tanh %224 : vector<16x16xf32>
    %237 = arith.mulf %5, %236 : vector<16x16xf32>
    %238 = arith.addf %235, %237 : vector<16x16xf32>
    %c0_73 = arith.constant 0 : index
    %c0_74 = arith.constant 0 : index
    %c0_75 = arith.constant 0 : index
    %c0_76 = arith.constant 0 : index
    %239 = vector.load %arg9[%c0_73, %c0_74, %c0_75, %c0_76] : memref<1x3x16x16xf32, #tpu.memory_space<vmem>>, vector<1x1x16x16xf32>
    %240 = vector.shape_cast %239 : vector<1x1x16x16xf32> to vector<16x16xf32>
    %241 = vector.shape_cast %238 : vector<16x16xf32> to vector<1x1x16x16xf32>
    tpu.vector_store %arg9[%c0_73, %c0_74, %c0_75, %c0_76], %241 {strides = array<i32>} : memref<1x3x16x16xf32, #tpu.memory_space<vmem>>, vector<1x1x16x16xf32>,
    %c0_77 = arith.constant 0 : index
    %c1_78 = arith.constant 1 : index
    %c0_79 = arith.constant 0 : index
    %c0_80 = arith.constant 0 : index
    %242 = vector.load %arg3[%c0_77, %c1_78, %c0_79, %c0_80] : memref<1x3x16x16xf32, #tpu.memory_space<vmem>>, vector<1x1x16x16xf32>
    %243 = vector.shape_cast %242 : vector<1x1x16x16xf32> to vector<16x16xf32>
    %244 = arith.mulf %3, %243 : vector<16x16xf32>
    %245 = math.tanh %228 : vector<16x16xf32>
    %246 = arith.mulf %5, %245 : vector<16x16xf32>
    %247 = arith.addf %244, %246 : vector<16x16xf32>
    %c0_81 = arith.constant 0 : index
    %c1_82 = arith.constant 1 : index
    %c0_83 = arith.constant 0 : index
    %c0_84 = arith.constant 0 : index
    %248 = vector.load %arg9[%c0_81, %c1_82, %c0_83, %c0_84] : memref<1x3x16x16xf32, #tpu.memory_space<vmem>>, vector<1x1x16x16xf32>
    %249 = vector.shape_cast %248 : vector<1x1x16x16xf32> to vector<16x16xf32>
    %250 = vector.shape_cast %247 : vector<16x16xf32> to vector<1x1x16x16xf32>
    tpu.vector_store %arg9[%c0_81, %c1_82, %c0_83, %c0_84], %250 {strides = array<i32>} : memref<1x3x16x16xf32, #tpu.memory_space<vmem>>, vector<1x1x16x16xf32>,
    %c0_85 = arith.constant 0 : index
    %c2_86 = arith.constant 2 : index
    %c0_87 = arith.constant 0 : index
    %c0_88 = arith.constant 0 : index
    %251 = vector.load %arg3[%c0_85, %c2_86, %c0_87, %c0_88] : memref<1x3x16x16xf32, #tpu.memory_space<vmem>>, vector<1x1x16x16xf32>
    %252 = vector.shape_cast %251 : vector<1x1x16x16xf32> to vector<16x16xf32>
    %253 = arith.mulf %3, %252 : vector<16x16xf32>
    %254 = math.tanh %232 : vector<16x16xf32>
    %255 = arith.mulf %5, %254 : vector<16x16xf32>
    %256 = arith.addf %253, %255 : vector<16x16xf32>
    %c0_89 = arith.constant 0 : index
    %c2_90 = arith.constant 2 : index
    %c0_91 = arith.constant 0 : index
    %c0_92 = arith.constant 0 : index
    %257 = vector.load %arg9[%c0_89, %c2_90, %c0_91, %c0_92] : memref<1x3x16x16xf32, #tpu.memory_space<vmem>>, vector<1x1x16x16xf32>
    %258 = vector.shape_cast %257 : vector<1x1x16x16xf32> to vector<16x16xf32>
    %259 = vector.shape_cast %256 : vector<16x16xf32> to vector<1x1x16x16xf32>
    tpu.vector_store %arg9[%c0_89, %c2_90, %c0_91, %c0_92], %259 {strides = array<i32>} : memref<1x3x16x16xf32, #tpu.memory_space<vmem>>, vector<1x1x16x16xf32>,
    return
  }
  func.func @transform_0(%arg0: i32, %arg1: i32) -> (i32, i32, i32) {
    %c0_i32 = arith.constant 0 : i32
    %c0_i32_0 = arith.constant 0 : i32
    return %arg0, %arg1, %c0_i32 : i32, i32, i32
  }
  func.func @transform_1(%arg0: i32, %arg1: i32) -> (i32, i32, i32, i32) {
    %c0_i32 = arith.constant 0 : i32
    %c0_i32_0 = arith.constant 0 : i32
    %c0_i32_1 = arith.constant 0 : i32
    return %arg0, %c0_i32, %arg1, %c0_i32_0 : i32, i32, i32, i32
  }
  func.func @transform_2(%arg0: i32, %arg1: i32) -> (i32, i32, i32) {
    %c0_i32 = arith.constant 0 : i32
    %c0_i32_0 = arith.constant 0 : i32
    return %arg0, %arg1, %c0_i32 : i32, i32, i32
  }
  func.func @transform_3(%arg0: i32, %arg1: i32) -> i32 {
    %c0_i32 = arith.constant 0 : i32
    %c0_i32_0 = arith.constant 0 : i32
    return %c0_i32 : i32
  }
  func.func @transform_4(%arg0: i32, %arg1: i32) -> i32 {
    %c0_i32 = arith.constant 0 : i32
    %c0_i32_0 = arith.constant 0 : i32
    return %c0_i32 : i32
  }
  func.func @transform_5(%arg0: i32, %arg1: i32) -> (i32, i32, i32, i32) {
    %c0_i32 = arith.constant 0 : i32
    %c0_i32_0 = arith.constant 0 : i32
    %c0_i32_1 = arith.constant 0 : i32
    return %arg0, %c0_i32, %arg1, %c0_i32_0 : i32, i32, i32, i32
  }
  func.func @transform_6(%arg0: i32, %arg1: i32) -> (i32, i32, i32, i32) {
    %c0_i32 = arith.constant 0 : i32
    %c0_i32_0 = arith.constant 0 : i32
    %c0_i32_1 = arith.constant 0 : i32
    return %arg0, %c0_i32, %arg1, %c0_i32_0 : i32, i32, i32, i32
  }
  func.func @transform_7(%arg0: i32, %arg1: i32) -> (i32, i32, i32, i32) {
    %c0_i32 = arith.constant 0 : i32
    %c0_i32_0 = arith.constant 0 : i32
    %c0_i32_1 = arith.constant 0 : i32
    return %arg0, %c0_i32, %arg1, %c0_i32_0 : i32, i32, i32, i32
  }
}

</mosaic_0001>

<bundles_post_ra>
// kernel: tpu_custom_call.1
= control target key start
LH: loop header
LB: loop body
LE: loop exit
PB: predicated region body
PF: predicated region fallthrough
CT: control target
= control target key end

     0   :  { %s2313_s0 = inlined_call_operand.hbm [shape: s32[2,16,16], index: 0, kind: input, shape index: {}]   ;;  %s2314_s1 = inlined_call_operand.hbm [shape: f32[2,3,16,16], index: 1, kind: input, shape index: {}]   ;;  %s2315_s2 = inlined_call_operand.hbm [shape: f32[2,16,16], index: 2, kind: input, shape index: {}]   ;;  %s2316_s3 = inlined_call_operand.vmem [shape: f32[36], index: 3, kind: input, shape index: {}]   ;;  %s2317_s4 = inlined_call_operand.vmem [shape: f32[3], index: 4, kind: input, shape index: {}]   ;;  %s2318_s5 = inlined_call_operand.hbm [shape: f32[2,9,16,16], index: 5, kind: output, shape index: {0}]   ;;  %s2319_s6 = inlined_call_operand.hbm [shape: f32[2,3,16,16], index: 6, kind: output, shape index: {1}]   ;;  %s2320_s7 = inlined_call_operand.hbm [shape: f32[2,3,16,16], index: 7, kind: output, shape index: {2}]  }
   0x1   :  { %2336 = sst [smem:[#allocation25_spill]] %s2313_s0 }
   0x2   :  { %2337 = sst [smem:[#allocation26_spill]] %s2314_s1 }
   0x3   :  { %2338 = sst [smem:[#allocation27_spill]] %s2316_s3 }
   0x4   :  { %2339 = sst [smem:[#allocation28_spill]] %s2317_s4 }
   0x5   :  { %13 = vsyncpa [#allocation3], 0 }
   0x6   :  { %15 = vsyncpa [#allocation3 + $0x1], 0 }
   0x7   :  { %16 = vsyncpa [#allocation7], 0 }
   0x8   :  { %18 = vsyncpa [#allocation7 + $0x1], 0 }
   0x9   :  { %19 = vsyncpa [#allocation5], 0 }
   0xa   :  { %20 = vsyncpa [#allocation11], 0 }
   0xb   :  { %21 = vsyncpa [#allocation4], 0 }
   0xc   :  { %23 = vsyncpa [#allocation4 + $0x1], 0 }
   0xd   :  { %24 = vsyncpa [#allocation14], 0 }
   0xe   :  { %26 = vsyncpa [#allocation14 + $0x1], 0  ;;  %s1659_s24 = smov 0   ;;  %s1661_s25 = smov 0  }
   0xf   :  { %s1663_s26 = smov 0   ;;  %s1665_s27 = smov 0  }
  0x10   :  { %s1667_s28 = smov 0   ;;  %s1669_s29 = smov 0  }
  0x11 LB: > { %2340 = sst [smem:[#allocation22_spill]] %s1600_s28  ;;  %s44_s30 = sadd.s32 1, %s1600_s28  ;;  %s1604_s29 = sphi %s1669_s29, %s32_s29   ;;  %s1600_s28 = sphi %s1667_s28, %s2371_s28   ;;  %s1596_s27 = sphi %s1665_s27, %s2370_s27   ;;  %s1592_s26 = sphi %s1663_s26, %s2374_s26   ;;  %s1588_s25 = sphi %s1661_s25, %s2373_s25   ;;  %s1584_s24 = sphi %s1659_s24, %s2372_s24  }
  0x12   : > { %s53_s8 = sadd.s32 1, %s1592_s26  ;;  %p46_p0 = scmp.ge.s32.totalorder %s44_s30, 2 }
  0x13   : > { %p60_p1 = scmp.ne.s32.totalorder %s1592_s26, %s1588_s25  ;;  %p61_p2 = scmp.eq.s32.totalorder %s1604_s29, 0 }
  0x14   : > { %s2376_s30 = smov (%p46_p0, %s44_s30), 0  ;;  %p1271_p5 = scmp.lt.s32.totalorder %s1604_s29, 2 }
  0x15   : > { %2341 = sst [smem:[#allocation23_spill]] %s2376_s30  ;;  %p62_p4 = por %p61_p2, %p60_p1 }
  0x16   : > { %s48_s9 = ssub.s32 %s1600_s28, %s2376_s30  ;;  %s1704_s10 = sand.u32 1, %s1592_s26  }
  0x17   : > { %p51_p6 = scmp.eq.s32.totalorder %s48_s9, 0  ;;  %p1706_p7 = pnand %p1271_p5, %p62_p4 }
  0x18   : > { %s317_s13 = sand.u32 1, %s1604_s29   ;;  %s1215_s14 = smul.u32 48, %s1704_s10 }
  0x19   : > { %s2342_s11 = scalar_select %p1706_p7, 1, 0 }
  0x1a   : > { %s1711_s12 = scalar_select %p51_p6, %s1592_s26, %s53_s8  }
  0x1b   : > { %s1216_s15 = smul.u32 768, %s1600_s28  ;;  %s2344_s1 = sld [smem:[#allocation26_spill]] }
  0x1c   : > { %2343 = sst [smem:[#allocation24_spill]] %s1711_s12  ;;  %s321_s19 = scalar_lea.vmem [#allocation6], %s1215_s14 }
  0x1d   : > { %s330_s20 = sshll.u32 %s321_s19, 4  ;;  %s1719_s21 = scalar_lea.sflag [#allocation7], %s317_s13  ;;  %s331_s20 = int_to_ptr.vmem [resolvable:$true] %s330_s20 }
  0x1e   : > { %p2327_p8 = pneg %p1706_p7  ;;  %s1355_s22 = scalar_lea.vmem %s331_s20, 768 }
  0x1f   : > { %p1356_p9 = scmp.ne.s32.totalorder %s331_s20, %s1355_s22  ;;  %s1606_s23 = smov [#allocation6]  }
  0x20   : > { %s1360_s8 = sshll.u32 %s1606_s23, 4  ;;  %s1361_s8 = int_to_ptr.vmem [resolvable:$false] %s1360_s8 }
  0x21   : > { %s329_s18 = scalar_lea.hbm %s2344_s1, %s1216_s15  ;;  %p1358_p10 = pnand %p1356_p9, %p2327_p8 }
  0x22   : > { %s1362_s9 = scalar_lea.vmem %s1361_s8, 1536  ;;  %p1363_p12 = scmp.lt.s32.totalorder %s331_s20, %s1361_s8 }
  0x23   : > { %p1359_p11 = pneg %p1358_p10  ;;  %p1364_p13 = scmp.lt.s32.totalorder %s1362_s9, %s1355_s22 }
  0x25   : > { %p1365_p0 = por %p1364_p13, %p1363_p12 }
  0x27   : > { %p1366_p2 = pnand %p1365_p0, %p1359_p11 }
  0x29   : > { %1369 = shalt.err (!%p1366_p2)
}
  0x2a   : > { %s2322_s14 = smov 128   ;;  %s2324_s13 = smov 8  }
  0x2b   : > { %1255 = dma.hbm_to_vmem [thread:$0]  (!%p1706_p7), %s329_s18, 768, %s331_s20, %s1719_s21, %s2322_s14, %s2322_s14, %s2324_s13  }
  0x2c   : > { %s1733_s15 = sadd.s32 4294967295, %s1604_s29   ;;  %s2321_s16 = sadd.s32 4294967294, %s1604_s29  }
  0x2d   : > { %p66_p4 = scmp.ne.s32.totalorder %s1588_s25, %s1584_s24  ;;  %p2328_p5 = scmp.eq.s32.totalorder %s1733_s15, 0 }
  0x2e   : > { %p190_p6 = scmp.eq.s32.totalorder %s1733_s15, 1  ;;  %p196_p9 = scmp.eq.s32.totalorder %s2321_s16, 1 }
  0x2f   : > { %p1107_p10 = scmp.ge.s32.totalorder %s1604_s29, 1  ;;  %p1745_p11 = por %p2328_p5, %p66_p4 }
  0x30   : > { %p1752_p12 = por %p190_p6, %p60_p1  ;;  %p1756_p13 = por %p196_p9, %p66_p4 }
  0x31   : > { %s2345_s17 = scalar_select %p1745_p11, 1, 0 }
  0x32   : > { %s2346_s18 = scalar_select %p1752_p12, 1, 0 }
  0x33   : > { %s2347_s19 = scalar_select %p1756_p13, 1, 0 }
  0x34   : > { %p259_p0 = scmp.lt.s32.totalorder %s1604_s29, 3  ;;  %s2348_s3 = sld [smem:[#allocation27_spill]] }
  0x35   : > { %s2350_s4 = sld [smem:[#allocation28_spill]]  ;;  %s1111_s20 = sshll.u32 %s1704_s10, 4 }
  0x36   : > { %p1764_p2 = pnand %p1107_p10, %p259_p0  ;;  %s1213_s22 = sshll.u32 %s1600_s28, 8 }
  0x37   : > { %s2352_s0 = sld [smem:[#allocation25_spill]] }
  0x38   : > { %s2349_s8 = scalar_select %p1764_p2, 1, 0 }
  0x39   : > { %p1242_p1 = pneg %p1764_p2 }
  0x3a   : > { %s272_s23 = sshll.u32 %s2348_s3, 4  ;;  %s273_s23 = int_to_ptr.vmem [resolvable:$true] %s272_s23 }
  0x3b   : > { %s283_s14 = sshll.u32 %s2350_s4, 4  ;;  %p1775_p4 = pnand %p1242_p1, %p2328_p5  ;;  %s284_s14 = int_to_ptr.vmem [resolvable:$true] %s283_s14 }
  0x3c   : > { %s1370_s12 = scalar_lea.vmem %s273_s23, 16  ;;  %p1378_p3 = scmp.lt.s32.totalorder %s273_s23, %s273_s23 }
  0x3d   : > { %s1784_s30 = scalar_lea.hbm %s2352_s0, %s1213_s22  ;;  %p1371_p6 = scmp.ne.s32.totalorder %s273_s23, %s1370_s12 }
  0x3e   : > { %p1372_p9 = pneg %p1775_p4  ;;  %p1379_p8 = scmp.lt.s32.totalorder %s1370_s12, %s1370_s12 }
  0x40   : > { %p1373_p10 = pnand %p1372_p9, %p1371_p6  ;;  %p1380_p1 = por %p1379_p8, %p1378_p3 }
  0x42   : > { %p1374_p0 = pneg %p1373_p10 }
  0x44   : > { %p1381_p5 = pnand %p1380_p1, %p1374_p0 }
  0x46   : > { %1384 = shalt.err (!%p1381_p5)
}
  0x47   : > { %s1609_s16 = smov [#allocation9]   ;;  %s1385_s9 = scalar_lea.vmem %s284_s14, 16 }
  0x48   : > { %1245 = dma.vmem_to_smem (!%p1775_p4), %s273_s23, 16, %s1609_s16, [#allocation5]  }
  0x49   : > { %p1386_p13 = scmp.ne.s32.totalorder %s284_s14, %s1385_s9  ;;  %p1393_p2 = scmp.lt.s32.totalorder %s284_s14, %s284_s14 }
  0x4a   : > { %p1394_p7 = scmp.lt.s32.totalorder %s1385_s9, %s1385_s9 }
  0x4b   : > { %p1388_p12 = pnand %p1386_p13, %p1372_p9 }
  0x4c   : > { %p1395_p6 = por %p1394_p7, %p1393_p2 }
  0x4d   : > { %p1389_p11 = pneg %p1388_p12 }
  0x4f   : > { %p1396_p10 = pnand %p1395_p6, %p1389_p11 }
  0x51   : > { %1399 = shalt.err (!%p1396_p10)
}
  0x52   : > { %s1610_s1 = smov [#allocation10]   ;;  %s298_s3 = scalar_lea.vmem [#allocation2], %s1111_s20 }
  0x53   : > { %1248 = dma.vmem_to_smem (!%p1775_p4), %s284_s14, 16, %s1610_s1, [#allocation11]  }
  0x54   : > { %s307_s12 = sshll.u32 %s298_s3, 4  ;;  %s1797_s0 = scalar_lea.hbm %s2315_s2, %s1213_s22  ;;  %s308_s12 = int_to_ptr.vmem [resolvable:$true] %s307_s12 }
  0x55   : > { %s295_s9 = scalar_lea.sflag [#allocation3], %s1704_s10  ;;  %s1413_s4 = scalar_lea.vmem %s308_s12, 256 }
  0x56   : > { %p1414_p3 = scmp.ne.s32.totalorder %s308_s12, %s1413_s4  ;;  %p2353_p7 = scmp.ne.s32.totalorder %s2342_s11, 0 }
  0x57   : > { %s1611_s13 = smov [#allocation2]  }
  0x58   : > { %p2354_p8 = pneg %p2353_p7  ;;  %s1418_s28 = sshll.u32 %s1611_s13, 4  ;;  %s1419_s28 = int_to_ptr.vmem [resolvable:$false] %s1418_s28 }
  0x59   : > { %s1420_s14 = scalar_lea.vmem %s1419_s28, 512  ;;  %p1421_p12 = scmp.lt.s32.totalorder %s308_s12, %s1419_s28 }
  0x5a   : > { %p1416_p5 = pnand %p1414_p3, %p2354_p8  ;;  %p1422_p13 = scmp.lt.s32.totalorder %s1420_s14, %s1413_s4 }
  0x5c   : > { %p1417_p11 = pneg %p1416_p5  ;;  %p1423_p2 = por %p1422_p13, %p1421_p12 }
  0x5e   : > { %p1424_p4 = pnand %p1423_p2, %p1417_p11 }
  0x60   : > { %1427 = shalt.err (!%p1424_p4)
}
  0x61   : > { %s2355_s22 = smov 8   ;;  %s2356_s1 = smov 128  }
  0x62   : > { %1252 = dma.hbm_to_vmem [thread:$0]  (!%p2353_p7), %s1784_s30, 256, %s308_s12, %s295_s9, %s2356_s1, %s2356_s1, %s2355_s22  }
  0x63   : > { %s344_s3 = scalar_lea.vmem [#allocation8], %s1111_s20  ;;  %p2357_p0 = pmov %p2354_p8 }
  0x64   : > { %s353_s23 = sshll.u32 %s344_s3, 4  ;;  %s1612_s4 = smov [#allocation8]   ;;  %s354_s23 = int_to_ptr.vmem [resolvable:$true] %s353_s23 }
  0x65   : > { %s1441_s16 = scalar_lea.vmem %s354_s23, 256  ;;  %s1446_s28 = sshll.u32 %s1612_s4, 4  ;;  %s1447_s28 = int_to_ptr.vmem [resolvable:$false] %s1446_s28 }
  0x66   : > { %p1442_p9 = scmp.ne.s32.totalorder %s354_s23, %s1441_s16  ;;  %s1448_s13 = scalar_lea.vmem %s1447_s28, 512 }
  0x67   : > { %p1449_p10 = scmp.lt.s32.totalorder %s354_s23, %s1447_s28  ;;  %p1450_p3 = scmp.lt.s32.totalorder %s1448_s13, %s1441_s16 }
  0x68   : > { %p1444_p1 = pnand %p1442_p9, %p2357_p0 }
  0x69   : > { %p1451_p8 = por %p1450_p3, %p1449_p10 }
  0x6a   : > { %p1445_p6 = pneg %p1444_p1 }
  0x6c   : > { %p1452_p5 = pnand %p1451_p8, %p1445_p6 }
  0x6e   : > { %1455 = shalt.err (!%p1452_p5)
}
  0x6f   : > { %1258 = dma.hbm_to_vmem [thread:$0]  (!%p2353_p7), %s1797_s0, 256, %s354_s23, %s1719_s21, %s2356_s1, %s2356_s1, %s2355_s22  }
  0x70   : > { %p2358_p11 = scmp.ne.s32.totalorder %s2349_s8, 0 }
  0x71   : > { %s1824_s30 = sand.u32 (!%p2358_p11), 1, %s1588_s25   ;;  %p2359_p12 = scmp.ne.s32.totalorder (!%p2358_p11), %s2345_s17, 0 }
  0x72   : > { %365 = sbr.rel (%p2358_p11) target bundleno = 260 (0x104), region = 40  ;;  %s1119_s10 = sshll.u32 (!%p2358_p11), %s1824_s30, 4 }
  0x73   : > { %s368_s20 = scalar_lea.sflag (!%p2358_p11), [#allocation3], %s1824_s30  ;;  %s1828_s12 = scalar_lea.vmem (!%p2358_p11), [#allocation2], %s1119_s10 }
  0x77   : > { %1559 = dma.done.wait (%p2359_p12), %s368_s20, 256  }
  0x78   : > { %1561 = vsyncadd (%p2359_p12), %s368_s20, 4294967040  ;;  %s376_s0 = sand.u32 1, %s1733_s15   ;;  %s1836_s11 = smul.u32 48, %s1824_s30 }
  0x79   : > { %s377_s21 = scalar_lea.sflag [#allocation7], %s376_s0 }
  0x7a   : > { %s380_s8 = scalar_lea.vmem [#allocation6], %s1836_s11 }
  0x7b   : > { %1563 = dma.done.wait (%p2359_p12), %s377_s21, 1024  }
  0x7c   : > { %1565 = vsyncadd (%p2359_p12), %s377_s21, 4294966272  ;;  %s389_s9 = scalar_lea.vmem [#allocation8], %s1119_s10  ;;  %p2360_p7 = scmp.eq.s32.totalorder %s1733_s15, 0 }
  0x7e   : > { %1567 = dma.done.wait (%p2360_p7), [#allocation5], 16   ;;  %p2361_p13 = pmov %p2360_p7 }
  0x7f   : > { %p2362_p2 = pmov %p2360_p7 }
  0x80   : > { %1569 = vsyncadd (%p2361_p13), [#allocation5], 4294967280 }
  0x81   : > { %1571 = dma.done.wait (%p2362_p2), [#allocation11], 16   ;;  %p2363_p4 = pmov %p2362_p2 }
  0x83   : > { %1573 = vsyncadd (%p2363_p4), [#allocation11], 4294967280 }
  0x84   : > { %402 = sfence }
  0x85   : > { %v457_v0 = vld [vmem:[%s389_s9] sm:$0xff]  ;;  %vm471_vm0 = vcmask 130048   ;;  %s1853_s17 = sld [smem:[#allocation9]]  ;;  %v458_v4 = vld [vmem:[%s389_s9 + $0x8] sm:$0xff]  ;;  %v1127_v8 = vld [vmem:[%s380_s8 + $0x10] sm:$0xff]  ;;  %s1868_s1 = scalar_lea.vmem [#allocation13], %s1836_s11 }
  0x86   : > { %v467_v1 = vld [vmem:[%s380_s8] sm:$0xff]  ;;  %v1855_v2 = vsub.f32 1.0, %v457_v0  ;;  %s1859_s14 = sld [smem:[#allocation9 + $0xc]]  ;;  %v468_v5 = vld [vmem:[%s380_s8 + $0x8] sm:$0xff]  ;;  %v1863_v6 = vsub.f32 1.0, %v458_v4  ;;  %v1128_v9 = vld [vmem:[%s380_s8 + $0x18] sm:$0xff]  ;;  %v1873_v11 = vmul.f32 %v1127_v8, %v457_v0 }
  0x87   : > { %v1857_v3 = vmul.f32 %v467_v1, %v457_v0  ;;  %s1861_s22 = sld [smem:[#allocation9 + $0x18]]  ;;  %v1865_v7 = vmul.f32 %v468_v5, %v458_v4  ;;  %v1134_v10 = vld [vmem:[%s380_s8 + $0x20] sm:$0xff]  ;;  %v1875_v12 = vmul.f32 %v1128_v9, %v458_v4  ;;  %v1135_v14 = vld [vmem:[%s380_s8 + $0x28] sm:$0xff]  ;;  %s1218_s3 = smul.u32 144, %s1824_s30  ;;  %v1613_v18 = vmov 0.0  }
  0x88   : > { %v1877_v13 = vmul.f32 %v1134_v10, %v457_v0  ;;  %v1881_v15 = vld [vmem:[%s1828_s12] sm:$0xff]  ;;  %s1883_s23 = sld [smem:[#allocation10]]  ;;  %v1888_v16 = vmul.f32 %v1135_v14, %v458_v4  ;;  %v1894_v17 = vld [vmem:[%s1828_s12 + $0x8] sm:$0xff]  ;;  %1129 = vst.msk [vmem:[%s1868_s1 + $0x10] sm:$0xff] %vm471_vm0, %v1873_v11  ;;  %p2364_p0 = scmp.ne.s32.totalorder %s2346_s18, 0 }
  0x89   : > { %472 = vst.msk [vmem:[%s1868_s1] sm:$0xff] %vm471_vm0, %v1857_v3  ;;  %473 = vst.msk [vmem:[%s1868_s1 + $0x8] sm:$0xff] %vm471_vm0, %v1865_v7  ;;  %s1890_s16 = sld [smem:[#allocation10 + $0x1]]  ;;  %vm544_vm1 = vcmp.eq.s32.totalorder %v1881_v15, 0  ;;  %vm570_vm2 = vcmp.eq.s32.totalorder %v1881_v15, 1  ;;  %vm597_vm3 = vcmp.eq.s32.totalorder %v1881_v15, 2 }
  0x8a   : > { %1130 = vst.msk [vmem:[%s1868_s1 + $0x18] sm:$0xff] %vm471_vm0, %v1875_v12  ;;  %1136 = vst.msk [vmem:[%s1868_s1 + $0x20] sm:$0xff] %vm471_vm0, %v1877_v13  ;;  %s1907_s4 = sld [smem:[#allocation10 + $0x2]]  ;;  %v1910_v19 = vsel %vm544_vm1, 1.0, %v1613_v18  ;;  %vm545_vm4 = vcmp.eq.s32.totalorder %v1894_v17, 0  ;;  %v1914_v20 = vsel %vm570_vm2, 1.0, %v1613_v18 }
  0x8b   : > { %v475_v21 = vstv %s1853_s17  ;;  %1137 = vst.msk [vmem:[%s1868_s1 + $0x28] sm:$0xff] %vm471_vm0, %v1888_v16  ;;  %s1920_s28 = sld [smem:[#allocation9 + $0x1]]  ;;  %s1922_s13 = scalar_lea.vmem [#allocation12], %s1218_s3  ;;  %v1934_v22 = vsel %vm545_vm4, 1.0, %v1613_v18  ;;  %vm571_vm5 = vcmp.eq.s32.totalorder %v1894_v17, 1  ;;  %v1943_v23 = vsel %vm597_vm3, 1.0, %v1613_v18 }
  0x8c   : > { %550 = vst.msk [vmem:[%s1922_s13] sm:$0xff] %vm471_vm0, %v1910_v19  ;;  %1195 = vst.msk [vmem:[%s1922_s13 + $0x80] sm:$0xff] %vm471_vm0, %v1855_v2  ;;  %v476_v24 = vmul.f32 %v475_v21, %v1857_v3  ;;  %v481_v25 = vstv %s1859_s14  ;;  %v477_v26 = vmul.f32 %v475_v21, %v1865_v7  ;;  %s1948_s10 = sld [smem:[#allocation9 + $0xd]]  ;;  %v1954_v27 = vsel %vm571_vm5, 1.0, %v1613_v18 }
  0x8d   : > { %1196 = vst.msk [vmem:[%s1922_s13 + $0x88] sm:$0xff] %vm471_vm0, %v1863_v6  ;;  %1148 = vst.msk [vmem:[%s1922_s13 + $0x10] sm:$0xff] %vm471_vm0, %v1914_v20  ;;  %v482_v28 = vmul.f32 %v481_v25, %v1857_v3  ;;  %v487_v29 = vstv %s1861_s22  ;;  %v483_v30 = vmul.f32 %v481_v25, %v1865_v7  ;;  %s1962_s20 = sld [smem:[#allocation9 + $0x19]]  ;;  %vm598_vm6 = vcmp.eq.s32.totalorder %v1894_v17, 2 }
  0x8e   : > { %551 = vst.msk [vmem:[%s1922_s13 + $0x8] sm:$0xff] %vm471_vm0, %v1934_v22  ;;  %1155 = vst.msk [vmem:[%s1922_s13 + $0x20] sm:$0xff] %vm471_vm0, %v1943_v23  ;;  %v488_v31 = vmul.f32 %v487_v29, %v1857_v3  ;;  %v462_v32 = vstv %s1883_s23  ;;  %s1970_s12 = sld [smem:[#allocation9 + $0x2]]  ;;  %v1973_v33 = vsel %vm598_vm6, 1.0, %v1613_v18  ;;  %v489_v34 = vmul.f32 %v487_v29, %v1865_v7 }
  0x8f   : > { %1149 = vst.msk [vmem:[%s1922_s13 + $0x18] sm:$0xff] %vm471_vm0, %v1954_v27  ;;  %v464_v35 = vstv %s1890_s16  ;;  %v478_v36 = vadd.f32 %v476_v24, %v462_v32  ;;  %s1977_s21 = sld [smem:[#allocation9 + $0xe]]  ;;  %1156 = vst.msk [vmem:[%s1922_s13 + $0x28] sm:$0xff] %vm471_vm0, %v1973_v33  ;;  %vm624_vm7 = vcmp.eq.s32.totalorder %v1881_v15, 3  ;;  %v479_v39 = vadd.f32 %v477_v26, %v462_v32 }
  0x90   : > { %v466_v37 = vstv %s1907_s4  ;;  %v484_v38 = vadd.f32 %v482_v28, %v464_v35  ;;  %s1984_s8 = sld [smem:[#allocation9 + $0x1a]]  ;;  %v1987_v40 = vsel %vm624_vm7, 1.0, %v1613_v18  ;;  %v485_v43 = vadd.f32 %v483_v30, %v464_v35 }
  0x91   : > { %v490_v41 = vadd.f32 %v488_v31, %v466_v37  ;;  %v501_v42 = vstv %s1920_s28  ;;  %s1990_s9 = sld [smem:[#allocation9 + $0x3]]  ;;  %1162 = vst.msk [vmem:[%s1922_s13 + $0x30] sm:$0xff] %vm471_vm0, %v1987_v40  ;;  %vm625_vm8 = vcmp.eq.s32.totalorder %v1894_v17, 3  ;;  %v491_v50 = vadd.f32 %v489_v34, %v466_v37 }
  0x92   : > { %v502_v44 = vmul.f32 %v501_v42, %v1873_v11  ;;  %v507_v45 = vstv %s1948_s10  ;;  %s1998_s17 = sld [smem:[#allocation9 + $0xf]]  ;;  %v503_v46 = vmul.f32 %v501_v42, %v1875_v12  ;;  %v2002_v47 = vsel %vm625_vm8, 1.0, %v1613_v18 }
  0x93   : > { %v508_v48 = vmul.f32 %v507_v45, %v1873_v11  ;;  %v513_v49 = vstv %s1962_s20  ;;  %s2006_s14 = sld [smem:[#allocation9 + $0x1b]]  ;;  %v509_v51 = vmul.f32 %v507_v45, %v1875_v12  ;;  %1163 = vst.msk [vmem:[%s1922_s13 + $0x38] sm:$0xff] %vm471_vm0, %v2002_v47  ;;  %vm651_vm9 = vcmp.eq.s32.totalorder %v1881_v15, 4 }
  0x94   : > { %v504_v52 = vadd.f32 %v502_v44, %v478_v36  ;;  %v514_v53 = vmul.f32 %v513_v49, %v1873_v11  ;;  %v527_v54 = vstv %s1970_s12  ;;  %v505_v55 = vadd.f32 %v503_v46, %v479_v39  ;;  %s2014_s22 = sld [smem:[#allocation9 + $0x4]] }
  0x95   : > { %v510_v56 = vadd.f32 %v508_v48, %v484_v38  ;;  %v528_v57 = vmul.f32 %v527_v54, %v1877_v13  ;;  %v533_v58 = vstv %s1977_s21  ;;  %v511_v59 = vadd.f32 %v509_v51, %v485_v43  ;;  %s2018_s3 = sld [smem:[#allocation9 + $0x10]] }
  0x96   : > { %v516_v60 = vadd.f32 %v514_v53, %v490_v41  ;;  %v534_v61 = vmul.f32 %v533_v58, %v1877_v13  ;;  %v539_v62 = vstv %s1984_s8  ;;  %v515_v63 = vmul.f32 %v513_v49, %v1875_v12  ;;  %s2023_s23 = sld [smem:[#allocation9 + $0x1c]] }
  0x97   : > { %v530_v0 = vadd.f32 %v528_v57, %v504_v52  ;;  %v540_v1 = vmul.f32 %v539_v62, %v1877_v13  ;;  %v553_v4 = vstv %s1990_s9  ;;  %v529_v5 = vmul.f32 %v527_v54, %v1888_v16  ;;  %s2028_s16 = sld [smem:[#allocation9 + $0x5]] }
  0x98   : > { %v536_v8 = vadd.f32 %v534_v61, %v510_v56  ;;  %v554_v9 = vmul.f32 %v1910_v19, %v553_v4  ;;  %v559_v10 = vstv %s1998_s17  ;;  %v517_v14 = vadd.f32 %v515_v63, %v491_v50  ;;  %s2032_s4 = sld [smem:[#allocation9 + $0x11]] }
  0x99   : > { %v542_v21 = vadd.f32 %v540_v1, %v516_v60  ;;  %v560_v24 = vmul.f32 %v1910_v19, %v559_v10  ;;  %v565_v25 = vstv %s2006_s14  ;;  %v531_v26 = vadd.f32 %v529_v5, %v505_v55  ;;  %s2039_s28 = sld [smem:[#allocation9 + $0x1d]]  ;;  %s862_s14 = sshll.u32 %s1868_s1, 4  ;;  %s2087_s14 = int_to_ptr.vmem [resolvable:$true] %s862_s14 }
  0x9a   : > { %v556_v28 = vadd.f32 %v554_v9, %v530_v0  ;;  %v566_v29 = vmul.f32 %v1910_v19, %v565_v25  ;;  %v535_v30 = vmul.f32 %v533_v58, %v1888_v16  ;;  %v541_v31 = vmul.f32 %v539_v62, %v1888_v16  ;;  %s2044_s10 = sld [smem:[#allocation9 + $0x6]] }
  0x9b   : > { %v562_v32 = vadd.f32 %v560_v24, %v536_v8  ;;  %v555_v34 = vmul.f32 %v1934_v22, %v553_v4  ;;  %v561_v35 = vmul.f32 %v1934_v22, %v559_v10  ;;  %v567_v36 = vmul.f32 %v1934_v22, %v565_v25  ;;  %s2047_s20 = sld [smem:[#allocation9 + $0x12]] }
  0x9c   : > { %v568_v37 = vadd.f32 %v566_v29, %v542_v21  ;;  %v537_v38 = vadd.f32 %v535_v30, %v511_v59  ;;  %v543_v19 = vadd.f32 %v541_v31, %v517_v14  ;;  %v580_v39 = vstv %s2014_s22  ;;  %s2053_s12 = sld [smem:[#allocation9 + $0x1e]] }
  0x9d   : > { %v557_v41 = vadd.f32 %v555_v34, %v531_v26  ;;  %v581_v42 = vmul.f32 %v1914_v20, %v580_v39  ;;  %v586_v43 = vstv %s2018_s3  ;;  %v592_v44 = vstv %s2023_s23  ;;  %s2060_s21 = sld [smem:[#allocation9 + $0x7]]  ;;  %s2335_s3 = smul.u32 768, %s1596_s27 }
  0x9e   : > { %v563_v22 = vadd.f32 %v561_v35, %v537_v38  ;;  %v569_v45 = vadd.f32 %v567_v36, %v543_v19  ;;  %v587_v46 = vmul.f32 %v1914_v20, %v586_v43  ;;  %v593_v48 = vmul.f32 %v1914_v20, %v592_v44  ;;  %s2064_s8 = sld [smem:[#allocation9 + $0x13]] }
  0x9f   : > { %v583_v49 = vadd.f32 %v581_v42, %v556_v28  ;;  %v582_v50 = vmul.f32 %v1954_v27, %v580_v39  ;;  %v588_v51 = vmul.f32 %v1954_v27, %v586_v43  ;;  %v594_v52 = vmul.f32 %v1954_v27, %v592_v44  ;;  %s2067_s9 = sld [smem:[#allocation9 + $0x1f]] }
  0xa0   : > { %v589_v53 = vadd.f32 %v587_v46, %v562_v32  ;;  %v595_v54 = vadd.f32 %v593_v48, %v568_v37  ;;  %v607_v55 = vstv %s2028_s16  ;;  %v613_v56 = vstv %s2032_s4  ;;  %s2073_s17 = sld [smem:[#allocation9 + $0x8]] }
  0xa1   : > { %v584_v57 = vadd.f32 %v582_v50, %v557_v41  ;;  %v590_v20 = vadd.f32 %v588_v51, %v563_v22  ;;  %v596_v58 = vadd.f32 %v594_v52, %v569_v45  ;;  %v608_v59 = vmul.f32 %v1943_v23, %v607_v55  ;;  %s2079_s22 = sld [smem:[#allocation9 + $0x14]] }
  0xa2   : > { %v614_v60 = vmul.f32 %v1943_v23, %v613_v56  ;;  %v619_v27 = vstv %s2039_s28  ;;  %v609_v61 = vmul.f32 %v1973_v33, %v607_v55  ;;  %v615_v62 = vmul.f32 %v1973_v33, %v613_v56  ;;  %s2084_s1 = sld [smem:[#allocation9 + $0x20]] }
  0xa3   : > { %v610_v63 = vadd.f32 %v608_v59, %v583_v49  ;;  %v620_v0 = vmul.f32 %v1943_v23, %v619_v27  ;;  %v621_v1 = vmul.f32 %v1973_v33, %v619_v27  ;;  %v634_v4 = vstv %s2044_s10  ;;  %s2100_s23 = sld [smem:[#allocation9 + $0x9]]  ;;  %s2111_s10 = scalar_lea.hbm %s2319_s6, %s2335_s3 }
  0xa4   : > { %v616_v5 = vadd.f32 %v614_v60, %v589_v53  ;;  %v611_v8 = vadd.f32 %v609_v61, %v584_v57  ;;  %v617_v9 = vadd.f32 %v615_v62, %v590_v20  ;;  %v635_v10 = vmul.f32 %v1987_v40, %v634_v4  ;;  %s2104_s16 = sld [smem:[#allocation9 + $0x15]] }
  0xa5   : > { %v622_v14 = vadd.f32 %v620_v0, %v595_v54  ;;  %v623_v21 = vadd.f32 %v621_v1, %v596_v58  ;;  %v640_v24 = vstv %s2047_s20  ;;  %v646_v25 = vstv %s2053_s12  ;;  %s2114_s20 = sld [smem:[#allocation9 + $0x21]] }
  0xa6   : > { %v637_v23 = vadd.f32 %v635_v10, %v610_v63  ;;  %v641_v33 = vmul.f32 %v1987_v40, %v640_v24  ;;  %v647_v26 = vmul.f32 %v1987_v40, %v646_v25  ;;  %v636_v28 = vmul.f32 %v2002_v47, %v634_v4  ;;  %s2120_s12 = sld [smem:[#allocation9 + $0xa]] }
  0xa7   : > { %v642_v29 = vmul.f32 %v2002_v47, %v640_v24  ;;  %v648_v30 = vmul.f32 %v2002_v47, %v646_v25  ;;  %v1167_v31 = vsel %vm651_vm9, 1.0, %v1613_v18  ;;  %v661_v32 = vstv %s2060_s21  ;;  %s2126_s21 = scalar_lea.sflag [#allocation14], %s376_s0 }
  0xa8   : > { %v643_v34 = vadd.f32 %v641_v33, %v616_v5  ;;  %v649_v35 = vadd.f32 %v647_v26, %v622_v14  ;;  %v638_v36 = vadd.f32 %v636_v28, %v611_v8  ;;  %1169 = vst.msk [vmem:[%s1922_s13 + $0x40] sm:$0xff] %vm471_vm0, %v1167_v31  ;;  %v662_v37 = vmul.f32 %v1167_v31, %v661_v32 }
  0xa9   : > { %v644_v40 = vadd.f32 %v642_v29, %v617_v9  ;;  %v650_v38 = vadd.f32 %v648_v30, %v623_v21  ;;  %v667_v19 = vstv %s2064_s8  ;;  %v673_v47 = vstv %s2067_s9  ;;  %s1456_s8 = scalar_lea.vmem %s2087_s14, 768  ;;  %s1614_s9 = smov [#allocation13]  }
  0xaa   : > { %v664_v39 = vadd.f32 %v662_v37, %v637_v23  ;;  %v668_v41 = vmul.f32 %v1167_v31, %v667_v19  ;;  %v674_v42 = vmul.f32 %v1167_v31, %v673_v47  ;;  %vm652_vm10 = vcmp.eq.s32.totalorder %v1894_v17, 4  ;;  %p1457_p9 = scmp.ne.s32.totalorder %s2087_s14, %s1456_s8 }
  0xab   : > { %v1168_v43 = vsel %vm652_vm10, 1.0, %v1613_v18  ;;  %vm678_vm11 = vcmp.eq.s32.totalorder %v1881_v15, 5  ;;  %v688_v44 = vstv %s2073_s17  ;;  %v694_v22 = vstv %s2079_s22  ;;  %s1460_s17 = sshll.u32 %s1614_s9, 4  ;;  %s1461_s17 = int_to_ptr.vmem [resolvable:$false] %s1460_s17 }
  0xac   : > { %v670_v45 = vadd.f32 %v668_v41, %v643_v34  ;;  %v676_v46 = vadd.f32 %v674_v42, %v649_v35  ;;  %1170 = vst.msk [vmem:[%s1922_s13 + $0x48] sm:$0xff] %vm471_vm0, %v1168_v43  ;;  %v663_v48 = vmul.f32 %v1168_v43, %v661_v32  ;;  %v669_v49 = vmul.f32 %v1168_v43, %v667_v19  ;;  %p1458_p1 = pnand %p1457_p9, %p2364_p0  ;;  %s1462_s22 = scalar_lea.vmem %s1461_s17, 1536 }
  0xad   : > { %p1463_p10 = scmp.lt.s32.totalorder %s2087_s14, %s1461_s17  ;;  %p1464_p3 = scmp.lt.s32.totalorder %s1462_s22, %s1456_s8 }
  0xae   : > { %p1459_p6 = pneg %p1458_p1 }
  0xaf   : > { %p1465_p8 = por %p1464_p3, %p1463_p10 }
  0xb1   : > { %p1466_p5 = pnand %p1465_p8, %p1459_p6 }
  0xb3   : > { %1469 = shalt.err (!%p1466_p5)
}
  0xb4   : > { %s1470_s15 = scalar_lea.hbm %s2111_s10, 768  ;;  %s1474_s28 = scalar_lea.hbm %s2319_s6, 1536 }
  0xb5   : > { %p1471_p11 = scmp.ne.s32.totalorder %s2111_s10, %s1470_s15  ;;  %p1475_p13 = scmp.lt.s32.totalorder %s2111_s10, %s2319_s6 }
  0xb6   : > { %p1476_p2 = scmp.lt.s32.totalorder %s1474_s28, %s1470_s15 }
  0xb7   : > { %p1472_p12 = pnand %p1471_p11, %p2364_p0 }
  0xb8   : > { %p1477_p4 = por %p1476_p2, %p1475_p13 }
  0xb9   : > { %p1473_p7 = pneg %p1472_p12 }
  0xbb   : > { %p1478_p9 = pnand %p1477_p4, %p1473_p7 }
  0xbd   : > { %1481 = shalt.err (!%p1478_p9)
}
  0xbe   : > { %s1615_s8 = smov 128   ;;  %s1616_s17 = smov 8   ;;  %v675_v50 = vmul.f32 %v1168_v43, %v673_v47  ;;  %v1174_v51 = vsel %vm678_vm11, 1.0, %v1613_v18  ;;  %v700_v52 = vstv %s2084_s1  ;;  %vm679_vm12 = vcmp.eq.s32.totalorder %v1894_v17, 5 }
  0xbf   : > { %1237 = dma.vmem_to_hbm [thread:$0]  (%p2364_p0), %s2087_s14, 768, %s2111_s10, %s2126_s21, %s1615_s8, %s1615_s8, %s1616_s17   ;;  %v665_v53 = vadd.f32 %v663_v48, %v638_v36  ;;  %v671_v54 = vadd.f32 %v669_v49, %v644_v40  ;;  %v689_v55 = vmul.f32 %v1174_v51, %v688_v44  ;;  %v695_v56 = vmul.f32 %v1174_v51, %v694_v22 }
  0xc0   : > { %s2157_s3 = sld [smem:[#allocation9 + $0x16]]  ;;  %1176 = vst.msk [vmem:[%s1922_s13 + $0x50] sm:$0xff] %vm471_vm0, %v1174_v51  ;;  %v677_v57 = vadd.f32 %v675_v50, %v650_v38  ;;  %v701_v20 = vmul.f32 %v1174_v51, %v700_v52  ;;  %v1175_v58 = vsel %vm679_vm12, 1.0, %v1613_v18  ;;  %vm705_vm13 = vcmp.eq.s32.totalorder %v1881_v15, 6  ;;  %s819_s0 = scalar_lea.sflag [#allocation4], %s1824_s30 }
  0xc1   : > { %s2161_s22 = sld [smem:[#allocation9 + $0x22]]  ;;  %v691_v59 = vadd.f32 %v689_v55, %v664_v39  ;;  %v697_v60 = vadd.f32 %v695_v56, %v670_v45  ;;  %1177 = vst.msk [vmem:[%s1922_s13 + $0x58] sm:$0xff] %vm471_vm0, %v1175_v58  ;;  %v690_v27 = vmul.f32 %v1175_v58, %v688_v44  ;;  %v696_v61 = vmul.f32 %v1175_v58, %v694_v22  ;;  %s1617_s28 = smov [#allocation12]  }
  0xc2   : > { %s2165_s14 = sld [smem:[#allocation9 + $0xb]]  ;;  %v703_v62 = vadd.f32 %v701_v20, %v676_v46  ;;  %v702_v63 = vmul.f32 %v1175_v58, %v700_v52  ;;  %v1181_v0 = vsel %vm705_vm13, 1.0, %v1613_v18  ;;  %v715_v1 = vstv %s2100_s23  ;;  %s1219_s23 = smul.u32 2304, %s1596_s27 }
  0xc3   : > { %s2169_s1 = sld [smem:[#allocation9 + $0x17]]  ;;  %v692_v4 = vadd.f32 %v690_v27, %v665_v53  ;;  %v698_v5 = vadd.f32 %v696_v61, %v671_v54  ;;  %1183 = vst.msk [vmem:[%s1922_s13 + $0x60] sm:$0xff] %vm471_vm0, %v1181_v0  ;;  %v716_v8 = vmul.f32 %v1181_v0, %v715_v1  ;;  %v721_v9 = vstv %s2104_s16  ;;  %s844_s16 = sshll.u32 %s1922_s13, 4  ;;  %s2204_s16 = int_to_ptr.vmem [resolvable:$true] %s844_s16 }
  0xc4   : > { %s2176_s10 = sld [smem:[#allocation9 + $0x23]]  ;;  %v704_v10 = vadd.f32 %v702_v63, %v677_v57  ;;  %v722_v14 = vmul.f32 %v1181_v0, %v721_v9  ;;  %v727_v21 = vstv %s2114_s20  ;;  %vm706_vm14 = vcmp.eq.s32.totalorder %v1894_v17, 6  ;;  %s2202_s15 = scalar_lea.hbm %s2318_s5, %s1219_s23 }
  0xc5   : > { %v718_v24 = vadd.f32 %v716_v8, %v691_v59  ;;  %v728_v25 = vmul.f32 %v1181_v0, %v727_v21  ;;  %v1182_v23 = vsel %vm706_vm14, 1.0, %v1613_v18  ;;  %vm732_vm15 = vcmp.eq.s32.totalorder %v1881_v15, 7  ;;  %s1482_s4 = scalar_lea.vmem %s2204_s16, 2304  ;;  %s1486_s9 = sshll.u32 %s1617_s28, 4  ;;  %s1487_s9 = int_to_ptr.vmem [resolvable:$false] %s1486_s9 }
  0xc6   : > { %v724_v33 = vadd.f32 %v722_v14, %v697_v60  ;;  %1184 = vst.msk [vmem:[%s1922_s13 + $0x68] sm:$0xff] %vm471_vm0, %v1182_v23  ;;  %v717_v26 = vmul.f32 %v1182_v23, %v715_v1  ;;  %v723_v28 = vmul.f32 %v1182_v23, %v721_v9  ;;  %v729_v29 = vmul.f32 %v1182_v23, %v727_v21  ;;  %p1483_p1 = scmp.ne.s32.totalorder %s2204_s16, %s1482_s4  ;;  %p1489_p3 = scmp.lt.s32.totalorder %s2204_s16, %s1487_s9 }
  0xc7   : > { %v730_v30 = vadd.f32 %v728_v25, %v703_v62  ;;  %v1188_v31 = vsel %vm732_vm15, 1.0, %v1613_v18  ;;  %v742_v32 = vstv %s2120_s12  ;;  %v748_v34 = vstv %s2157_s3 }
  0xc8   : > { %v719_v35 = vadd.f32 %v717_v26, %v692_v4  ;;  %v725_v36 = vadd.f32 %v723_v28, %v698_v5  ;;  %v731_v15 = vadd.f32 %v729_v29, %v704_v10  ;;  %1190 = vst.msk [vmem:[%s1922_s13 + $0x70] sm:$0xff] %vm471_vm0, %v1188_v31  ;;  %v743_v37 = vmul.f32 %v1188_v31, %v742_v32  ;;  %p1484_p6 = pnand %p1483_p1, %p2364_p0 }
  0xc9   : > { %v749_v40 = vmul.f32 %v1188_v31, %v748_v34  ;;  %v754_v38 = vstv %s2161_s22  ;;  %v763_v19 = vstv %s2165_s14  ;;  %v769_v47 = vstv %s2169_s1 }
  0xca   : > { %v745_v39 = vadd.f32 %v743_v37, %v718_v24  ;;  %v755_v41 = vmul.f32 %v1188_v31, %v754_v38  ;;  %v764_v42 = vmul.f32 %v763_v19, %v1855_v2  ;;  %v770_v43 = vmul.f32 %v769_v47, %v1855_v2  ;;  %p1485_p10 = pneg %p1484_p6 }
  0xcb   : > { %v751_v44 = vadd.f32 %v749_v40, %v724_v33  ;;  %v775_v22 = vstv %s2176_s10  ;;  %vm733_vm1 = vcmp.eq.s32.totalorder %v1894_v17, 7  ;;  %v765_v45 = vmul.f32 %v763_v19, %v1863_v6 }
  0xcc   : > { %v757_v46 = vadd.f32 %v755_v41, %v730_v30  ;;  %v766_v48 = vadd.f32 %v764_v42, %v745_v39  ;;  %v776_v49 = vmul.f32 %v775_v22, %v1855_v2  ;;  %v1189_v50 = vsel %vm733_vm1, 1.0, %v1613_v18 }
  0xcd   : > { %v772_v17 = vadd.f32 %v770_v43, %v751_v44  ;;  %1191 = vst.msk [vmem:[%s1922_s13 + $0x78] sm:$0xff] %vm471_vm0, %v1189_v50  ;;  %v744_v51 = vmul.f32 %v1189_v50, %v742_v32  ;;  %v750_v52 = vmul.f32 %v1189_v50, %v748_v34  ;;  %v756_v53 = vmul.f32 %v1189_v50, %v754_v38  ;;  %s1488_s13 = scalar_lea.vmem %s1487_s9, 4608 }
  0xce   : > { %v778_v54 = vadd.f32 %v776_v49, %v757_v46  ;;  %1330 = vtanh.f32 %v766_v48  ;;  %v771_v55 = vmul.f32 %v769_v47, %v1863_v6  ;;  %v777_v56 = vmul.f32 %v775_v22, %v1863_v6  ;;  %p1490_p8 = scmp.lt.s32.totalorder %s1488_s13, %s1482_s4 }
  0xd0   : > { %p1491_p5 = por %p1490_p8, %p1489_p3 }
  0xd2   : > { %p1492_p11 = pnand %p1491_p5, %p1485_p10 }
  0xd4   : > { %1495 = shalt.err (!%p1492_p11)
}
  0xd5   : > { %s1496_s3 = scalar_lea.hbm %s2202_s15, 2304  ;;  %s1500_s14 = scalar_lea.hbm %s2318_s5, 4608 }
  0xd6   : > { %p1497_p12 = scmp.ne.s32.totalorder %s2202_s15, %s1496_s3  ;;  %p1501_p2 = scmp.lt.s32.totalorder %s2202_s15, %s2318_s5 }
  0xd7   : > { %p1502_p4 = scmp.lt.s32.totalorder %s1500_s14, %s1496_s3 }
  0xd8   : > { %p1498_p7 = pnand %p1497_p12, %p2364_p0 }
  0xd9   : > { %p1503_p9 = por %p1502_p4, %p1501_p2 }
  0xda   : > { %p1499_p13 = pneg %p1498_p7 }
  0xdc   : > { %p1504_p1 = pnand %p1503_p9, %p1499_p13 }
  0xde   : > { %1507 = shalt.err (!%p1504_p1)
}
  0xdf   : > { %1236 = dma.vmem_to_hbm [thread:$0]  (%p2364_p0), %s2204_s16, 2304, %s2202_s15, %s819_s0, %s1615_s8, %s1615_s8, %s1616_s17   ;;  %1332 = vtanh.f32 %v772_v17  ;;  %v746_v18 = vadd.f32 %v744_v51, %v719_v35  ;;  %v752_v57 = vadd.f32 %v750_v52, %v725_v36  ;;  %v758_v20 = vadd.f32 %v756_v53, %v731_v15  ;;  %v1331_v27 = vpop.eup %1330 }
  0xe0   : > { %1334 = vtanh.f32 %v778_v54  ;;  %v786_v62 = vmul.f32 %v1331_v27, %v1855_v2  ;;  %s448_s23 = scalar_lea.vmem [#allocation15], %s1836_s11  ;;  %s2365_s11 = smul.u32 768, %s1596_s27 }
  0xe1   : > { %v767_v58 = vadd.f32 %v765_v45, %v746_v18  ;;  %v773_v59 = vadd.f32 %v771_v55, %v752_v57  ;;  %v779_v60 = vadd.f32 %v777_v56, %v758_v20  ;;  %s880_s16 = sshll.u32 %s448_s23, 4  ;;  %s1618_s4 = smov [#allocation15]   ;;  %s2251_s16 = int_to_ptr.vmem [resolvable:$true] %s880_s16 }
  0xe2   : > { %v788_v1 = vadd.f32 %v786_v62, %v1857_v3  ;;  %s2260_s15 = scalar_lea.hbm %s2320_s7, %s2365_s11  ;;  %s1508_s0 = scalar_lea.vmem %s2251_s16, 768 }
  0xe3   : > { %1336 = vtanh.f32 %v767_v58  ;;  %p1509_p6 = scmp.ne.s32.totalorder %s2251_s16, %s1508_s0  ;;  %s1512_s28 = sshll.u32 %s1618_s4, 4  ;;  %s1513_s28 = int_to_ptr.vmem [resolvable:$false] %s1512_s28 }
  0xe4   : > { %1338 = vtanh.f32 %v773_v59  ;;  %790 = vst.msk [vmem:[%s448_s23] sm:$0xff] %vm471_vm0, %v788_v1  ;;  %s1514_s9 = scalar_lea.vmem %s1513_s28, 1536  ;;  %p1515_p8 = scmp.lt.s32.totalorder %s2251_s16, %s1513_s28 }
  0xe5   : > { %1340 = vtanh.f32 %v779_v60  ;;  %p1510_p10 = pnand %p1509_p6, %p2364_p0  ;;  %p1516_p5 = scmp.lt.s32.totalorder %s1514_s9, %s1508_s0 }
  0xe7   : > { %p1511_p3 = pneg %p1510_p10  ;;  %p1517_p11 = por %p1516_p5, %p1515_p8 }
  0xe9   : > { %p1518_p12 = pnand %p1517_p11, %p1511_p3 }
  0xec   : > { %v1333_v61 = vpop.eup %1332 }
  0xed   : > { %v1335_v63 = vpop.eup %1334  ;;  %v798_v0 = vmul.f32 %v1333_v61, %v1855_v2 }
  0xee   : > { %v811_v4 = vmul.f32 %v1335_v63, %v1855_v2 }
  0xef   : > { %v800_v5 = vadd.f32 %v798_v0, %v1873_v11 }
  0xf0   : > { %v1337_v8 = vpop.eup %1336  ;;  %v813_v9 = vadd.f32 %v811_v4, %v1877_v13 }
  0xf1   : > { %v1339_v10 = vpop.eup %1338  ;;  %v787_v14 = vmul.f32 %v1337_v8, %v1863_v6  ;;  %1202 = vst.msk [vmem:[%s448_s23 + $0x10] sm:$0xff] %vm471_vm0, %v800_v5 }
  0xf2   : > { %v1341_v21 = vpop.eup %1340  ;;  %v799_v3 = vmul.f32 %v1339_v10, %v1863_v6  ;;  %1206 = vst.msk [vmem:[%s448_s23 + $0x20] sm:$0xff] %vm471_vm0, %v813_v9 }
  0xf3   : > { %v789_v2 = vadd.f32 %v787_v14, %v1865_v7  ;;  %v812_v11 = vmul.f32 %v1341_v21, %v1863_v6 }
  0xf4   : > { %v801_v24 = vadd.f32 %v799_v3, %v1875_v12 }
  0xf5   : > { %791 = vst.msk [vmem:[%s448_s23 + $0x8] sm:$0xff] %vm471_vm0, %v789_v2  ;;  %v814_v13 = vadd.f32 %v812_v11, %v1888_v16 }
  0xf6   : > { %1203 = vst.msk [vmem:[%s448_s23 + $0x18] sm:$0xff] %vm471_vm0, %v801_v24 }
  0xf7   : > { %1207 = vst.msk [vmem:[%s448_s23 + $0x28] sm:$0xff] %vm471_vm0, %v814_v13 }
  0xf8   : > { %1521 = shalt.err (!%p1518_p12)
}
  0xf9   : > { %s1522_s27 = scalar_lea.hbm %s2260_s15, 768  ;;  %s1526_s30 = scalar_lea.hbm %s2320_s7, 1536 }
  0xfa   : > { %p1523_p7 = scmp.ne.s32.totalorder %s2260_s15, %s1522_s27  ;;  %p1527_p4 = scmp.lt.s32.totalorder %s2260_s15, %s2320_s7 }
  0xfb   : > { %p1528_p9 = scmp.lt.s32.totalorder %s1526_s30, %s1522_s27 }
  0xfc   : > { %p1524_p13 = pnand %p1523_p7, %p2364_p0 }
  0xfd   : > { %p1529_p1 = por %p1528_p9, %p1527_p4 }
  0xfe   : > { %p1525_p2 = pneg %p1524_p13 }
 0x100   : > { %p1530_p6 = pnand %p1529_p1, %p1525_p2 }
 0x102   : > { %1533 = shalt.err (!%p1530_p6)
}
 0x103   : > { %1238 = dma.vmem_to_hbm [thread:$0]  (%p2364_p0), %s2251_s16, 768, %s2260_s15, %s2126_s21, %s1615_s8, %s1615_s8, %s1616_s17  }
 0x104 PF: > { %s895_s1 = sand.u32 1, %s1584_s24   ;;  %p2366_p10 = scmp.ne.s32.totalorder %s2347_s19, 0 }
 0x105   : > { %p2367_p3 = scmp.ge.s32.totalorder %s1604_s29, 2  ;;  %s896_s10 = scalar_lea.sflag [#allocation4], %s895_s1 }
 0x107   : > { %p1260_p8 = pnand %p2367_p3, %p2366_p10 }
 0x109   : > { %p1261_p5 = pneg %p1260_p8 }
 0x10b   : > { %1575 = dma.done.wait (%p1261_p5), %s896_s10, 2304  }
 0x10c   : > { %1577 = vsyncadd (%p1261_p5), %s896_s10, 4294964992  ;;  %s2368_s18 = sadd.s32 4294967294, %s1604_s29  }
 0x10d   : > { %s904_s23 = sand.u32 1, %s2368_s18  }
 0x10e   : > { %s905_s11 = scalar_lea.sflag [#allocation14], %s904_s23 }
 0x10f   : > { %1579 = dma.done.wait (%p1261_p5), %s905_s11, 1536  }
 0x110   : > { %1581 = vsyncadd (%p1261_p5), %s905_s11, 4294965760  ;;  %s32_s29 = sadd.s32 1, %s1604_s29   ;;  %s2369_s21 = sld [smem:[#allocation24_spill]] }
 0x111   : > { %p29_p0 = scmp.ge.s32.totalorder %s32_s29, 4   ;;  %s2370_s27 = sld [smem:[#allocation22_spill]] }
 0x112   : > { %s2371_s28 = sld [smem:[#allocation23_spill]]  ;;  %s2372_s24 = smov %s1588_s25 }
 0x113   : > { %s2373_s25 = smov %s1592_s26  ;;  %31 = sbr.rel (!%p29_p0) target bundleno = 17 (0x11), region = 164 }
 0x116   : > { %s2374_s26 = smov %s2369_s21 }
 0x118   :  { %919 = vsyncpa [#allocation3], 1 }
 0x119   :  { %921 = vsyncpa [#allocation3 + $0x1], 1 }
 0x11a   :  { %922 = vsyncpa [#allocation7], 1 }
 0x11b   :  { %924 = vsyncpa [#allocation7 + $0x1], 1 }
 0x11c   :  { %925 = vsyncpa [#allocation4], 1 }
 0x11d   :  { %927 = vsyncpa [#allocation4 + $0x1], 1 }
 0x11e   :  { %928 = vsyncpa [#allocation14], 1 }
 0x11f   :  { %930 = vsyncpa [#allocation14 + $0x1], 1 }
 0x120   :  { %931 = vsyncpa [#allocation5], 1 }
 0x121   :  { %933 = vsyncpa [#allocation5 + $0x1], 1 }
 0x122   :  { %934 = vsyncpa [#allocation11], 1 }

</bundles_post_ra>
